<compile_context>
chip_gen: v5e
topology: v5e:2x2
jax: 0.10.0
libtpu: 0.0.40
codegen_flags: <defaults>
</compile_context>

<pallas_src>
import functools

import jax
import jax.numpy as jnp
from jax import lax
from jax.experimental import pallas as pl
from jax.experimental.pallas import tpu as pltpu

LN_EPS = 1e-5  # CLIP layer_norm_eps default


def _layer_norm(x, gamma, beta, eps=LN_EPS):
    # x: (M, D) f32, gamma/beta: (1, D) f32
    mean = jnp.mean(x, axis=-1, keepdims=True)
    var = jnp.mean((x - mean) ** 2, axis=-1, keepdims=True)
    return (x - mean) * lax.rsqrt(var + eps) * gamma + beta


def clip_encoder_layer_kernel(num_heads, block_b,
                              x_ref,
                              ln1_g_ref, ln1_b_ref,
                              wq_ref, bq_ref, wk_ref, bk_ref,
                              wv_ref, bv_ref, wo_ref, bo_ref,
                              ln2_g_ref, ln2_b_ref,
                              w1_ref, b1_ref, w2_ref, b2_ref,
                              out_ref,
                              ctx_ref, h2_ref, acc_ref):
    Bt, S, D = x_ref.shape
    M = Bt * S
    head_dim = D // num_heads
    # heads per lane-dense (128-wide) store group; fall back to per-head stores otherwise.
    hpg = max(1, 128 // head_dim)
    if num_heads % hpg != 0:
        hpg = 1
    group_w = hpg * head_dim

    j = pl.program_id(1)          # streamed intermediate-dim (I) axis, "arbitrary"

    # ---------------- attention block + MLP init (once per batch block) ----------------
    @pl.when(j == 0)
    def _attention_and_init():
        # Upcast to f32 for LN/softmax/residual math (no-op for f32 inputs).
        x = x_ref[...].astype(jnp.float32).reshape(M, D)
        h = _layer_norm(x, ln1_g_ref[...], ln1_b_ref[...])
        hb = h.astype(jnp.bfloat16)                 # bf16 MXU operand, f32 accumulation

        # head-dim scale is pre-folded into wq / bq by the wrapper.
        q = (jnp.dot(hb, wq_ref[...], preferred_element_type=jnp.float32)
             + bq_ref[...]).astype(jnp.bfloat16)
        k = (jnp.dot(hb, wk_ref[...], preferred_element_type=jnp.float32)
             + bk_ref[...]).astype(jnp.bfloat16)
        v = (jnp.dot(hb, wv_ref[...], preferred_element_type=jnp.float32)
             + bv_ref[...]).astype(jnp.bfloat16)

        # Per-(batch-in-block, head-group) attention.  All slices are static; each group's
        # context is concatenated in-register and written with one lane-dense (S, 128)
        # store into the VMEM scratch (no masked sub-128-lane stores, no K transpose).
        # TODO(synk): if MLIR shows per-head vxpose/lane-shift traffic from the 32/64-lane
        # q/k/v column slices, repack K once per batch element outside the head loop.
        for b in range(block_b):
            rows = slice(b * S, (b + 1) * S)
            for g in range(num_heads // hpg):
                parts = []
                for hh in range(g * hpg, (g + 1) * hpg):
                    cols = slice(hh * head_dim, (hh + 1) * head_dim)
                    qh, kh, vh = q[rows, cols], k[rows, cols], v[rows, cols]  # (S, hd) bf16
                    # scores = qh @ kh.T without materializing the transpose
                    scores = lax.dot_general(
                        qh, kh, dimension_numbers=(((1,), (1,)), ((), ())),
                        preferred_element_type=jnp.float32)                   # (S, S) f32
                    scores = scores - jnp.max(scores, axis=-1, keepdims=True)
                    p = jnp.exp(scores)
                    p = p * pl.reciprocal(jnp.sum(p, axis=-1, keepdims=True), approx=True)
                    parts.append(jnp.dot(p.astype(jnp.bfloat16), vh,
                                         preferred_element_type=jnp.float32))
                grp = parts[0] if hpg == 1 else jnp.concatenate(parts, axis=-1)
                gcols = slice(g * group_w, (g + 1) * group_w)
                ctx_ref[rows, gcols] = grp.astype(jnp.bfloat16)

        attn = jnp.dot(ctx_ref[...], wo_ref[...],
                       preferred_element_type=jnp.float32) + bo_ref[...]
        h1 = x + attn                                  # residual in f32

        # cache ln2(h1) (bf16) for the streamed MLP; fold residual + fc2 bias into the
        # f32 accumulator so nothing else has to be added at the end.
        h2_ref[...] = _layer_norm(h1, ln2_g_ref[...], ln2_b_ref[...]).astype(jnp.bfloat16)
        acc_ref[...] = h1 + b2_ref[...]

    # ---------------- MLP block, streamed over the intermediate dim ----------------
    f = (jnp.dot(h2_ref[...], w1_ref[...], preferred_element_type=jnp.float32)
         + b1_ref[...])
    f = f * jax.nn.sigmoid(1.702 * f)                  # quick_gelu (CLIP default)
    acc_ref[...] += jnp.dot(f.astype(jnp.bfloat16), w2_ref[...],
                            preferred_element_type=jnp.float32)

    @pl.when(j == pl.num_programs(1) - 1)
    def _finalize():
        out_ref[...] = acc_ref[...].reshape(Bt, S, D).astype(out_ref.dtype)


def _pick_block_b(batch, seq, target_rows=1024):
    """Divisor Bt of `batch` s.t. M = Bt*seq stays near target_rows, preferring an EVEN
    number of parallel grid steps (v7x: 2 TensorCores share the parallel axis)."""
    cands = [bt for bt in range(1, batch + 1)
             if batch % bt == 0 and bt * seq <= max(target_rows, seq)]

    def score(bt):
        g = batch // bt
        return ((g % 2 == 0), g >= 2, bt)   # even grid first, then >=2 steps, then big tile

    return max(cands, key=score)


def _pick_block_i(inter, target=2048):
    """Largest multiple-of-128 divisor of `inter` that is <= target (else full `inter`)."""
    if inter <= target:
        return inter
    start = target - (target % 128)
    for t in range(start, 127, -128):
        if inter % t == 0:
            return t
    return inter


def _vmem_limit_bytes():
    """Generation-aware scoped-VMEM budget: ~75% of physical VMEM, capped at 112 MiB
    (v5e/v6e: 96 MiB of 128; v7x: 48 MiB of 64).  Falls back to 48 MiB."""
    try:
        cap = pltpu.get_tpu_info().vmem_capacity_bytes
    except Exception:
        return 48 * 1024 * 1024
    return int(min(cap * 3 // 4, 112 * 1024 * 1024))


def clip_encoder_layer(x, params, num_heads, block_b=None, block_i=None):
    B, S, D = x.shape
    I = params["w1"].shape[1]
    assert D % num_heads == 0, "hidden size must be divisible by num_heads"
    # Lane/sublane alignment: keep S a multiple of 8 so the (Bt,S,D)->(M,D) reshape and
    # per-batch row slices stay on (8,128) tile boundaries (pad 257->264 for real CLIP).
    assert S % 8 == 0, "pad the sequence length to a multiple of 8 (see TODO at top)"

    if block_b is None:
        block_b = _pick_block_b(B, S)
    if block_i is None:
        block_i = _pick_block_i(I)
    assert B % block_b == 0 and I % block_i == 0

    M = block_b * S
    head_dim = D // num_heads
    scale = float(head_dim) ** -0.5

    # bf16 weight storage: halves resident VMEM + DMA volume, feeds the MXU at full rate;
    # accumulation stays f32.  Biases / LN params stay f32.  Fold the attention scale into
    # wq/bq so the kernel skips an (M,D) f32 multiply.
    bf = lambda w: w.astype(jnp.bfloat16)
    f32 = lambda w: w.astype(jnp.float32)
    wq_s = bf(params["wq"].astype(jnp.float32) * scale)
    bq_s = f32(params["bq"]) * scale

    def wspec(shape):
        # constant weight/bias tile: DMA'd once, single-buffered (no wasted VMEM)
        return pl.BlockSpec(shape, lambda i, j: (0,) * len(shape),
                            pipeline_mode=pl.Buffered(1))

    kernel = functools.partial(clip_encoder_layer_kernel, num_heads, block_b)
    return pl.pallas_call(
        kernel,
        out_shape=jax.ShapeDtypeStruct((B, S, D), x.dtype),
        grid_spec=pltpu.PrefetchScalarGridSpec(
            num_scalar_prefetch=0,
            grid=(B // block_b, I // block_i),
            in_specs=[
                pl.BlockSpec((block_b, S, D), lambda i, j: (i, 0, 0)),    # x
                wspec((1, D)), wspec((1, D)),                             # ln1 gamma/beta
                wspec((D, D)), wspec((1, D)),                             # Wq, bq (pre-scaled)
                wspec((D, D)), wspec((1, D)),                             # Wk, bk
                wspec((D, D)), wspec((1, D)),                             # Wv, bv
                wspec((D, D)), wspec((1, D)),                             # Wo, bo
                wspec((1, D)), wspec((1, D)),                             # ln2 gamma/beta
                pl.BlockSpec((D, block_i), lambda i, j: (0, j)),          # fc1 W slab
                pl.BlockSpec((1, block_i), lambda i, j: (0, j)),          # fc1 b slab
                pl.BlockSpec((block_i, D), lambda i, j: (j, 0)),          # fc2 W slab
                wspec((1, D)),                                            # fc2 bias
            ],
            out_specs=pl.BlockSpec((block_b, S, D), lambda i, j: (i, 0, 0)),
            scratch_shapes=[
                pltpu.VMEM((M, D), jnp.bfloat16),   # per-head-group attention context
                pltpu.VMEM((M, D), jnp.bfloat16),   # cached ln2(h1)
                pltpu.VMEM((M, D), jnp.float32),    # MLP accumulator (holds h1 + b2 + ...)
            ],
        ),
        compiler_params=pltpu.CompilerParams(
            dimension_semantics=("parallel", "arbitrary"),
            vmem_limit_bytes=_vmem_limit_bytes(),
        ),
    )(x,
      f32(params["ln1_g"]), f32(params["ln1_b"]),
      wq_s, bq_s,
      bf(params["wk"]), f32(params["bk"]),
      bf(params["wv"]), f32(params["bv"]),
      bf(params["wo"]), f32(params["bo"]),
      f32(params["ln2_g"]), f32(params["ln2_b"]),
      bf(params["w1"]), f32(params["b1"]),
      bf(params["w2"]), f32(params["b2"]))


# ---------------- pure-JAX reference (f32, for correctness check) ----------------
def reference_forward(x, p, num_heads):
    B, S, D = x.shape
    hd = D // num_heads
    scale = float(hd) ** -0.5

    def ln(z, g, b):
        m = jnp.mean(z, axis=-1, keepdims=True)
        v = jnp.mean((z - m) ** 2, axis=-1, keepdims=True)
        return (z - m) * lax.rsqrt(v + LN_EPS) * g + b

    resid = x
    h = ln(x, p["ln1_g"], p["ln1_b"])
    q = (h @ p["wq"] + p["bq"]) * scale
    k = h @ p["wk"] + p["bk"]
    v = h @ p["wv"] + p["bv"]
    q = q.reshape(B, S, num_heads, hd)
    k = k.reshape(B, S, num_heads, hd)
    v = v.reshape(B, S, num_heads, hd)
    scores = jnp.einsum("bqhd,bkhd->bhqk", q, k)
    attn = jax.nn.softmax(scores, axis=-1)
    ctx = jnp.einsum("bhqk,bkhd->bqhd", attn, v).reshape(B, S, D)
    h = resid + (ctx @ p["wo"] + p["bo"])

    resid = h
    h2 = ln(h, p["ln2_g"], p["ln2_b"])
    f = h2 @ p["w1"] + p["b1"]
    f = f * jax.nn.sigmoid(1.702 * f)
    f = f @ p["w2"] + p["b2"]
    return resid + f


def init_params(key, D, I):
    keys = jax.random.split(key, 8)
    s = 0.02
    return {
        "ln1_g": jnp.ones((1, D), jnp.float32),
        "ln1_b": jnp.zeros((1, D), jnp.float32),
        "wq": s * jax.random.normal(keys[0], (D, D), jnp.float32),
        "bq": jnp.zeros((1, D), jnp.float32),
        "wk": s * jax.random.normal(keys[1], (D, D), jnp.float32),
        "bk": jnp.zeros((1, D), jnp.float32),
        "wv": s * jax.random.normal(keys[2], (D, D), jnp.float32),
        "bv": jnp.zeros((1, D), jnp.float32),
        "wo": s * jax.random.normal(keys[3], (D, D), jnp.float32),
        "bo": jnp.zeros((1, D), jnp.float32),
        "ln2_g": jnp.ones((1, D), jnp.float32),
        "ln2_b": jnp.zeros((1, D), jnp.float32),
        "w1": s * jax.random.normal(keys[4], (D, I), jnp.float32),
        "b1": jnp.zeros((1, I), jnp.float32),
        "w2": s * jax.random.normal(keys[5], (I, D), jnp.float32),
        "b2": jnp.zeros((1, D), jnp.float32),
    }


if __name__ == "__main__":
    # Small but lane-dense shapes (D multiple of 128, S multiple of 8) so the demo
    # exercises the same layout/tiling path as real CLIP dims.
    B, S, D = 4, 16, 128
    NUM_HEADS = 4              # head_dim = 32 -> 4 heads per lane-dense store group
    INTERMEDIATE = 4 * D       # 512 (CLIP-style 4x MLP)

    key = jax.random.PRNGKey(0)
    kx, kp = jax.random.split(key)
    masked_emb = jax.random.normal(kx, (B, S, D), jnp.float32)
    params = init_params(kp, D, INTERMEDIATE)

    # block_i=256 -> two streamed I-steps, exercising the accumulator / MLP-streaming path.
    out = clip_encoder_layer(masked_emb, params, NUM_HEADS, block_i=256)
    out = jax.block_until_ready(out)

    ref = reference_forward(masked_emb, params, NUM_HEADS)
    assert out.shape == (B, S, D)
    # bf16 MXU operands + approx reciprocal -> compare against the f32 reference loosely.
    max_err = jnp.max(jnp.abs(out - ref))
    assert jnp.allclose(out, ref, rtol=2e-2, atol=2e-2), f"max abs err {max_err}"

    print("KERNEL_OK")
</pallas_src>

<mosaic_0001>
module attributes {stable_mosaic.version = 11 : i64} {
  func.func @clip_encoder_layer_kernel(%arg0: i32, %arg1: i32, %arg2: memref<2x16x128xf32, #tpu.memory_space<vmem>>, %arg3: memref<1x128xf32, #tpu.memory_space<vmem>>, %arg4: memref<1x128xf32, #tpu.memory_space<vmem>>, %arg5: memref<128x128xbf16, #tpu.memory_space<vmem>>, %arg6: memref<1x128xf32, #tpu.memory_space<vmem>>, %arg7: memref<128x128xbf16, #tpu.memory_space<vmem>>, %arg8: memref<1x128xf32, #tpu.memory_space<vmem>>, %arg9: memref<128x128xbf16, #tpu.memory_space<vmem>>, %arg10: memref<1x128xf32, #tpu.memory_space<vmem>>, %arg11: memref<128x128xbf16, #tpu.memory_space<vmem>>, %arg12: memref<1x128xf32, #tpu.memory_space<vmem>>, %arg13: memref<1x128xf32, #tpu.memory_space<vmem>>, %arg14: memref<1x128xf32, #tpu.memory_space<vmem>>, %arg15: memref<128x256xbf16, #tpu.memory_space<vmem>>, %arg16: memref<1x256xf32, #tpu.memory_space<vmem>>, %arg17: memref<256x128xbf16, #tpu.memory_space<vmem>>, %arg18: memref<1x128xf32, #tpu.memory_space<vmem>>, %arg19: memref<2x16x128xf32, #tpu.memory_space<vmem>>, %arg20: memref<32x128xbf16, #tpu.memory_space<vmem>>, %arg21: memref<32x128xbf16, #tpu.memory_space<vmem>>, %arg22: memref<32x128xf32, #tpu.memory_space<vmem>>) attributes {dimension_semantics = [#tpu.dimension_semantics<parallel>, #tpu.dimension_semantics<arbitrary>], iteration_bounds = array<i64: 2, 2>, scalar_prefetch = 0 : i64, scratch_operands = 3 : i64, tpu.core_type = #tpu.core_type<tc>, window_params = [{transform_indices = @transform_0, window_bounds = array<i64: 2, 16, 128>}, {pipeline_mode = #tpu.pipeline_mode<synchronous>, transform_indices = @transform_1, window_bounds = array<i64: 1, 128>}, {pipeline_mode = #tpu.pipeline_mode<synchronous>, transform_indices = @transform_2, window_bounds = array<i64: 1, 128>}, {pipeline_mode = #tpu.pipeline_mode<synchronous>, transform_indices = @transform_3, window_bounds = array<i64: 128, 128>}, {pipeline_mode = #tpu.pipeline_mode<synchronous>, transform_indices = @transform_4, window_bounds = array<i64: 1, 128>}, {pipeline_mode = #tpu.pipeline_mode<synchronous>, transform_indices = @transform_5, window_bounds = array<i64: 128, 128>}, {pipeline_mode = #tpu.pipeline_mode<synchronous>, transform_indices = @transform_6, window_bounds = array<i64: 1, 128>}, {pipeline_mode = #tpu.pipeline_mode<synchronous>, transform_indices = @transform_7, window_bounds = array<i64: 128, 128>}, {pipeline_mode = #tpu.pipeline_mode<synchronous>, transform_indices = @transform_8, window_bounds = array<i64: 1, 128>}, {pipeline_mode = #tpu.pipeline_mode<synchronous>, transform_indices = @transform_9, window_bounds = array<i64: 128, 128>}, {pipeline_mode = #tpu.pipeline_mode<synchronous>, transform_indices = @transform_10, window_bounds = array<i64: 1, 128>}, {pipeline_mode = #tpu.pipeline_mode<synchronous>, transform_indices = @transform_11, window_bounds = array<i64: 1, 128>}, {pipeline_mode = #tpu.pipeline_mode<synchronous>, transform_indices = @transform_12, window_bounds = array<i64: 1, 128>}, {transform_indices = @transform_13, window_bounds = array<i64: 128, 256>}, {transform_indices = @transform_14, window_bounds = array<i64: 1, 256>}, {transform_indices = @transform_15, window_bounds = array<i64: 256, 128>}, {pipeline_mode = #tpu.pipeline_mode<synchronous>, transform_indices = @transform_16, window_bounds = array<i64: 1, 128>}, {transform_indices = @transform_17, window_bounds = array<i64: 2, 16, 128>}]} {
    %c0_i32 = arith.constant 0 : i32
    %0 = arith.cmpi eq, %arg1, %c0_i32 : i32
    %1 = arith.extui %0 : i1 to i32
    %c0_i32_0 = arith.constant 0 : i32
    %2 = arith.cmpi ne, %1, %c0_i32_0 : i32
    scf.if %2 {
      %c0_16 = arith.constant 0 : index
      %c0_17 = arith.constant 0 : index
      %c0_18 = arith.constant 0 : index
      %26 = vector.load %arg2[%c0_16, %c0_17, %c0_18] : memref<2x16x128xf32, #tpu.memory_space<vmem>>, vector<2x16x128xf32>
      %27 = vector.shape_cast %26 : vector<2x16x128xf32> to vector<32x128xf32>
      %c0_19 = arith.constant 0 : index
      %c0_20 = arith.constant 0 : index
      %28 = vector.load %arg3[%c0_19, %c0_20] : memref<1x128xf32, #tpu.memory_space<vmem>>, vector<1x128xf32>
      %c0_21 = arith.constant 0 : index
      %c0_22 = arith.constant 0 : index
      %29 = vector.load %arg4[%c0_21, %c0_22] : memref<1x128xf32, #tpu.memory_space<vmem>>, vector<1x128xf32>
      %cst_23 = arith.constant dense<0.000000e+00> : vector<32xf32>
      %30 = vector.multi_reduction <add>, %27, %cst_23 [1] : vector<32x128xf32> to vector<32xf32>
      %31 = vector.shape_cast %30 : vector<32xf32> to vector<32x1xf32>
      %cst_24 = arith.constant 1.280000e+02 : f32
      %32 = vector.broadcast %cst_24 : f32 to vector<32x1xf32>
      %33 = arith.divf %31, %32 : vector<32x1xf32>
      %34 = vector.broadcast %33 : vector<32x1xf32> to vector<32x128xf32>
      %35 = arith.subf %27, %34 : vector<32x128xf32>
      %36 = arith.mulf %35, %35 : vector<32x128xf32>
      %cst_25 = arith.constant dense<0.000000e+00> : vector<32xf32>
      %37 = vector.multi_reduction <add>, %36, %cst_25 [1] : vector<32x128xf32> to vector<32xf32>
      %38 = vector.shape_cast %37 : vector<32xf32> to vector<32x1xf32>
      %cst_26 = arith.constant 1.280000e+02 : f32
      %39 = vector.broadcast %cst_26 : f32 to vector<32x1xf32>
      %40 = arith.divf %38, %39 : vector<32x1xf32>
      %41 = vector.broadcast %33 : vector<32x1xf32> to vector<32x128xf32>
      %42 = arith.subf %27, %41 : vector<32x128xf32>
      %cst_27 = arith.constant 9.99999974E-6 : f32
      %43 = vector.broadcast %cst_27 : f32 to vector<32x1xf32>
      %44 = arith.addf %40, %43 : vector<32x1xf32>
      %45 = math.rsqrt %44 : vector<32x1xf32>
      %46 = vector.broadcast %45 : vector<32x1xf32> to vector<32x128xf32>
      %47 = arith.mulf %42, %46 : vector<32x128xf32>
      %48 = vector.broadcast %28 : vector<1x128xf32> to vector<32x128xf32>
      %49 = arith.mulf %47, %48 : vector<32x128xf32>
      %50 = vector.broadcast %29 : vector<1x128xf32> to vector<32x128xf32>
      %51 = arith.addf %49, %50 : vector<32x128xf32>
      %52 = arith.truncf %51 : vector<32x128xf32> to vector<32x128xbf16>
      %c0_28 = arith.constant 0 : index
      %c0_29 = arith.constant 0 : index
      %53 = vector.load %arg5[%c0_28, %c0_29] : memref<128x128xbf16, #tpu.memory_space<vmem>>, vector<128x128xbf16>
      %cst_30 = arith.constant dense<0.000000e+00> : vector<32x128xf32>
      %54 = tpu.matmul %52, %53, %cst_30 {dimension_numbers = #tpu.dot_dimension_numbers<[1], [0], [0], [1], [0, 0, 1, 1], [], []>} : vector<32x128xbf16>, vector<128x128xbf16>, vector<32x128xf32> -> vector<32x128xf32>
      %c0_31 = arith.constant 0 : index
      %c0_32 = arith.constant 0 : index
      %55 = vector.load %arg6[%c0_31, %c0_32] : memref<1x128xf32, #tpu.memory_space<vmem>>, vector<1x128xf32>
      %56 = vector.broadcast %55 : vector<1x128xf32> to vector<32x128xf32>
      %57 = arith.addf %54, %56 : vector<32x128xf32>
      %58 = arith.truncf %57 : vector<32x128xf32> to vector<32x128xbf16>
      %c0_33 = arith.constant 0 : index
      %c0_34 = arith.constant 0 : index
      %59 = vector.load %arg7[%c0_33, %c0_34] : memref<128x128xbf16, #tpu.memory_space<vmem>>, vector<128x128xbf16>
      %cst_35 = arith.constant dense<0.000000e+00> : vector<32x128xf32>
      %60 = tpu.matmul %52, %59, %cst_35 {dimension_numbers = #tpu.dot_dimension_numbers<[1], [0], [0], [1], [0, 0, 1, 1], [], []>} : vector<32x128xbf16>, vector<128x128xbf16>, vector<32x128xf32> -> vector<32x128xf32>
      %c0_36 = arith.constant 0 : index
      %c0_37 = arith.constant 0 : index
      %61 = vector.load %arg8[%c0_36, %c0_37] : memref<1x128xf32, #tpu.memory_space<vmem>>, vector<1x128xf32>
      %62 = vector.broadcast %61 : vector<1x128xf32> to vector<32x128xf32>
      %63 = arith.addf %60, %62 : vector<32x128xf32>
      %64 = arith.truncf %63 : vector<32x128xf32> to vector<32x128xbf16>
      %c0_38 = arith.constant 0 : index
      %c0_39 = arith.constant 0 : index
      %65 = vector.load %arg9[%c0_38, %c0_39] : memref<128x128xbf16, #tpu.memory_space<vmem>>, vector<128x128xbf16>
      %cst_40 = arith.constant dense<0.000000e+00> : vector<32x128xf32>
      %66 = tpu.matmul %52, %65, %cst_40 {dimension_numbers = #tpu.dot_dimension_numbers<[1], [0], [0], [1], [0, 0, 1, 1], [], []>} : vector<32x128xbf16>, vector<128x128xbf16>, vector<32x128xf32> -> vector<32x128xf32>
      %c0_41 = arith.constant 0 : index
      %c0_42 = arith.constant 0 : index
      %67 = vector.load %arg10[%c0_41, %c0_42] : memref<1x128xf32, #tpu.memory_space<vmem>>, vector<1x128xf32>
      %68 = vector.broadcast %67 : vector<1x128xf32> to vector<32x128xf32>
      %69 = arith.addf %66, %68 : vector<32x128xf32>
      %70 = arith.truncf %69 : vector<32x128xf32> to vector<32x128xbf16>
      %71 = vector.extract_strided_slice %58 {offsets = [0, 0], sizes = [16, 32], strides = [1, 1]} : vector<32x128xbf16> to vector<16x32xbf16>
      %72 = vector.extract_strided_slice %64 {offsets = [0, 0], sizes = [16, 32], strides = [1, 1]} : vector<32x128xbf16> to vector<16x32xbf16>
      %73 = vector.extract_strided_slice %70 {offsets = [0, 0], sizes = [16, 32], strides = [1, 1]} : vector<32x128xbf16> to vector<16x32xbf16>
      %cst_43 = arith.constant dense<0.000000e+00> : vector<16x16xf32>
      %74 = tpu.matmul %71, %72, %cst_43 {dimension_numbers = #tpu.dot_dimension_numbers<[1], [1], [0], [0], [0, 0, 1, 0], [], []>} : vector<16x32xbf16>, vector<16x32xbf16>, vector<16x16xf32> -> vector<16x16xf32>
      %cst_44 = arith.constant dense<0xFF800000> : vector<16xf32>
      %75 = vector.multi_reduction <maximumf>, %74, %cst_44 [1] : vector<16x16xf32> to vector<16xf32>
      %76 = vector.shape_cast %75 : vector<16xf32> to vector<16x1xf32>
      %77 = vector.broadcast %76 : vector<16x1xf32> to vector<16x16xf32>
      %78 = arith.subf %74, %77 : vector<16x16xf32>
      %79 = math.exp %78 : vector<16x16xf32>
      %cst_45 = arith.constant dense<0.000000e+00> : vector<16xf32>
      %80 = vector.multi_reduction <add>, %79, %cst_45 [1] : vector<16x16xf32> to vector<16xf32>
      %81 = vector.shape_cast %80 : vector<16xf32> to vector<16x1xf32>
      %82 = tpu.reciprocal %81 {approx = true} : vector<16x1xf32> -> vector<16x1xf32>
      %83 = vector.broadcast %82 : vector<16x1xf32> to vector<16x16xf32>
      %84 = arith.mulf %79, %83 : vector<16x16xf32>
      %85 = arith.truncf %84 : vector<16x16xf32> to vector<16x16xbf16>
      %cst_46 = arith.constant dense<0.000000e+00> : vector<16x32xf32>
      %86 = tpu.matmul %85, %73, %cst_46 {dimension_numbers = #tpu.dot_dimension_numbers<[1], [0], [0], [1], [0, 0, 1, 1], [], []>} : vector<16x16xbf16>, vector<16x32xbf16>, vector<16x32xf32> -> vector<16x32xf32>
      %87 = vector.extract_strided_slice %58 {offsets = [0, 32], sizes = [16, 32], strides = [1, 1]} : vector<32x128xbf16> to vector<16x32xbf16>
      %88 = vector.extract_strided_slice %64 {offsets = [0, 32], sizes = [16, 32], strides = [1, 1]} : vector<32x128xbf16> to vector<16x32xbf16>
      %89 = vector.extract_strided_slice %70 {offsets = [0, 32], sizes = [16, 32], strides = [1, 1]} : vector<32x128xbf16> to vector<16x32xbf16>
      %cst_47 = arith.constant dense<0.000000e+00> : vector<16x16xf32>
      %90 = tpu.matmul %87, %88, %cst_47 {dimension_numbers = #tpu.dot_dimension_numbers<[1], [1], [0], [0], [0, 0, 1, 0], [], []>} : vector<16x32xbf16>, vector<16x32xbf16>, vector<16x16xf32> -> vector<16x16xf32>
      %cst_48 = arith.constant dense<0xFF800000> : vector<16xf32>
      %91 = vector.multi_reduction <maximumf>, %90, %cst_48 [1] : vector<16x16xf32> to vector<16xf32>
      %92 = vector.shape_cast %91 : vector<16xf32> to vector<16x1xf32>
      %93 = vector.broadcast %92 : vector<16x1xf32> to vector<16x16xf32>
      %94 = arith.subf %90, %93 : vector<16x16xf32>
      %95 = math.exp %94 : vector<16x16xf32>
      %cst_49 = arith.constant dense<0.000000e+00> : vector<16xf32>
      %96 = vector.multi_reduction <add>, %95, %cst_49 [1] : vector<16x16xf32> to vector<16xf32>
      %97 = vector.shape_cast %96 : vector<16xf32> to vector<16x1xf32>
      %98 = tpu.reciprocal %97 {approx = true} : vector<16x1xf32> -> vector<16x1xf32>
      %99 = vector.broadcast %98 : vector<16x1xf32> to vector<16x16xf32>
      %100 = arith.mulf %95, %99 : vector<16x16xf32>
      %101 = arith.truncf %100 : vector<16x16xf32> to vector<16x16xbf16>
      %cst_50 = arith.constant dense<0.000000e+00> : vector<16x32xf32>
      %102 = tpu.matmul %101, %89, %cst_50 {dimension_numbers = #tpu.dot_dimension_numbers<[1], [0], [0], [1], [0, 0, 1, 1], [], []>} : vector<16x16xbf16>, vector<16x32xbf16>, vector<16x32xf32> -> vector<16x32xf32>
      %103 = vector.extract_strided_slice %58 {offsets = [0, 64], sizes = [16, 32], strides = [1, 1]} : vector<32x128xbf16> to vector<16x32xbf16>
      %104 = vector.extract_strided_slice %64 {offsets = [0, 64], sizes = [16, 32], strides = [1, 1]} : vector<32x128xbf16> to vector<16x32xbf16>
      %105 = vector.extract_strided_slice %70 {offsets = [0, 64], sizes = [16, 32], strides = [1, 1]} : vector<32x128xbf16> to vector<16x32xbf16>
      %cst_51 = arith.constant dense<0.000000e+00> : vector<16x16xf32>
      %106 = tpu.matmul %103, %104, %cst_51 {dimension_numbers = #tpu.dot_dimension_numbers<[1], [1], [0], [0], [0, 0, 1, 0], [], []>} : vector<16x32xbf16>, vector<16x32xbf16>, vector<16x16xf32> -> vector<16x16xf32>
      %cst_52 = arith.constant dense<0xFF800000> : vector<16xf32>
      %107 = vector.multi_reduction <maximumf>, %106, %cst_52 [1] : vector<16x16xf32> to vector<16xf32>
      %108 = vector.shape_cast %107 : vector<16xf32> to vector<16x1xf32>
      %109 = vector.broadcast %108 : vector<16x1xf32> to vector<16x16xf32>
      %110 = arith.subf %106, %109 : vector<16x16xf32>
      %111 = math.exp %110 : vector<16x16xf32>
      %cst_53 = arith.constant dense<0.000000e+00> : vector<16xf32>
      %112 = vector.multi_reduction <add>, %111, %cst_53 [1] : vector<16x16xf32> to vector<16xf32>
      %113 = vector.shape_cast %112 : vector<16xf32> to vector<16x1xf32>
      %114 = tpu.reciprocal %113 {approx = true} : vector<16x1xf32> -> vector<16x1xf32>
      %115 = vector.broadcast %114 : vector<16x1xf32> to vector<16x16xf32>
      %116 = arith.mulf %111, %115 : vector<16x16xf32>
      %117 = arith.truncf %116 : vector<16x16xf32> to vector<16x16xbf16>
      %cst_54 = arith.constant dense<0.000000e+00> : vector<16x32xf32>
      %118 = tpu.matmul %117, %105, %cst_54 {dimension_numbers = #tpu.dot_dimension_numbers<[1], [0], [0], [1], [0, 0, 1, 1], [], []>} : vector<16x16xbf16>, vector<16x32xbf16>, vector<16x32xf32> -> vector<16x32xf32>
      %119 = vector.extract_strided_slice %58 {offsets = [0, 96], sizes = [16, 32], strides = [1, 1]} : vector<32x128xbf16> to vector<16x32xbf16>
      %120 = vector.extract_strided_slice %64 {offsets = [0, 96], sizes = [16, 32], strides = [1, 1]} : vector<32x128xbf16> to vector<16x32xbf16>
      %121 = vector.extract_strided_slice %70 {offsets = [0, 96], sizes = [16, 32], strides = [1, 1]} : vector<32x128xbf16> to vector<16x32xbf16>
      %cst_55 = arith.constant dense<0.000000e+00> : vector<16x16xf32>
      %122 = tpu.matmul %119, %120, %cst_55 {dimension_numbers = #tpu.dot_dimension_numbers<[1], [1], [0], [0], [0, 0, 1, 0], [], []>} : vector<16x32xbf16>, vector<16x32xbf16>, vector<16x16xf32> -> vector<16x16xf32>
      %cst_56 = arith.constant dense<0xFF800000> : vector<16xf32>
      %123 = vector.multi_reduction <maximumf>, %122, %cst_56 [1] : vector<16x16xf32> to vector<16xf32>
      %124 = vector.shape_cast %123 : vector<16xf32> to vector<16x1xf32>
      %125 = vector.broadcast %124 : vector<16x1xf32> to vector<16x16xf32>
      %126 = arith.subf %122, %125 : vector<16x16xf32>
      %127 = math.exp %126 : vector<16x16xf32>
      %cst_57 = arith.constant dense<0.000000e+00> : vector<16xf32>
      %128 = vector.multi_reduction <add>, %127, %cst_57 [1] : vector<16x16xf32> to vector<16xf32>
      %129 = vector.shape_cast %128 : vector<16xf32> to vector<16x1xf32>
      %130 = tpu.reciprocal %129 {approx = true} : vector<16x1xf32> -> vector<16x1xf32>
      %131 = vector.broadcast %130 : vector<16x1xf32> to vector<16x16xf32>
      %132 = arith.mulf %127, %131 : vector<16x16xf32>
      %133 = arith.truncf %132 : vector<16x16xf32> to vector<16x16xbf16>
      %cst_58 = arith.constant dense<0.000000e+00> : vector<16x32xf32>
      %134 = tpu.matmul %133, %121, %cst_58 {dimension_numbers = #tpu.dot_dimension_numbers<[1], [0], [0], [1], [0, 0, 1, 1], [], []>} : vector<16x16xbf16>, vector<16x32xbf16>, vector<16x32xf32> -> vector<16x32xf32>
      %135 = tpu.concatenate %86, %102, %118, %134 in 1 : vector<16x32xf32>, vector<16x32xf32>, vector<16x32xf32>, vector<16x32xf32> -> vector<16x128xf32>
      %136 = arith.truncf %135 : vector<16x128xf32> to vector<16x128xbf16>
      %c0_59 = arith.constant 0 : index
      %c0_60 = arith.constant 0 : index
      %137 = vector.load %arg20[%c0_59, %c0_60] : memref<32x128xbf16, #tpu.memory_space<vmem>>, vector<16x128xbf16>
      tpu.vector_store %arg20[%c0_59, %c0_60], %136 {strides = array<i32>} : memref<32x128xbf16, #tpu.memory_space<vmem>>, vector<16x128xbf16>,
      %138 = vector.extract_strided_slice %58 {offsets = [16, 0], sizes = [16, 32], strides = [1, 1]} : vector<32x128xbf16> to vector<16x32xbf16>
      %139 = vector.extract_strided_slice %64 {offsets = [16, 0], sizes = [16, 32], strides = [1, 1]} : vector<32x128xbf16> to vector<16x32xbf16>
      %140 = vector.extract_strided_slice %70 {offsets = [16, 0], sizes = [16, 32], strides = [1, 1]} : vector<32x128xbf16> to vector<16x32xbf16>
      %cst_61 = arith.constant dense<0.000000e+00> : vector<16x16xf32>
      %141 = tpu.matmul %138, %139, %cst_61 {dimension_numbers = #tpu.dot_dimension_numbers<[1], [1], [0], [0], [0, 0, 1, 0], [], []>} : vector<16x32xbf16>, vector<16x32xbf16>, vector<16x16xf32> -> vector<16x16xf32>
      %cst_62 = arith.constant dense<0xFF800000> : vector<16xf32>
      %142 = vector.multi_reduction <maximumf>, %141, %cst_62 [1] : vector<16x16xf32> to vector<16xf32>
      %143 = vector.shape_cast %142 : vector<16xf32> to vector<16x1xf32>
      %144 = vector.broadcast %143 : vector<16x1xf32> to vector<16x16xf32>
      %145 = arith.subf %141, %144 : vector<16x16xf32>
      %146 = math.exp %145 : vector<16x16xf32>
      %cst_63 = arith.constant dense<0.000000e+00> : vector<16xf32>
      %147 = vector.multi_reduction <add>, %146, %cst_63 [1] : vector<16x16xf32> to vector<16xf32>
      %148 = vector.shape_cast %147 : vector<16xf32> to vector<16x1xf32>
      %149 = tpu.reciprocal %148 {approx = true} : vector<16x1xf32> -> vector<16x1xf32>
      %150 = vector.broadcast %149 : vector<16x1xf32> to vector<16x16xf32>
      %151 = arith.mulf %146, %150 : vector<16x16xf32>
      %152 = arith.truncf %151 : vector<16x16xf32> to vector<16x16xbf16>
      %cst_64 = arith.constant dense<0.000000e+00> : vector<16x32xf32>
      %153 = tpu.matmul %152, %140, %cst_64 {dimension_numbers = #tpu.dot_dimension_numbers<[1], [0], [0], [1], [0, 0, 1, 1], [], []>} : vector<16x16xbf16>, vector<16x32xbf16>, vector<16x32xf32> -> vector<16x32xf32>
      %154 = vector.extract_strided_slice %58 {offsets = [16, 32], sizes = [16, 32], strides = [1, 1]} : vector<32x128xbf16> to vector<16x32xbf16>
      %155 = vector.extract_strided_slice %64 {offsets = [16, 32], sizes = [16, 32], strides = [1, 1]} : vector<32x128xbf16> to vector<16x32xbf16>
      %156 = vector.extract_strided_slice %70 {offsets = [16, 32], sizes = [16, 32], strides = [1, 1]} : vector<32x128xbf16> to vector<16x32xbf16>
      %cst_65 = arith.constant dense<0.000000e+00> : vector<16x16xf32>
      %157 = tpu.matmul %154, %155, %cst_65 {dimension_numbers = #tpu.dot_dimension_numbers<[1], [1], [0], [0], [0, 0, 1, 0], [], []>} : vector<16x32xbf16>, vector<16x32xbf16>, vector<16x16xf32> -> vector<16x16xf32>
      %cst_66 = arith.constant dense<0xFF800000> : vector<16xf32>
      %158 = vector.multi_reduction <maximumf>, %157, %cst_66 [1] : vector<16x16xf32> to vector<16xf32>
      %159 = vector.shape_cast %158 : vector<16xf32> to vector<16x1xf32>
      %160 = vector.broadcast %159 : vector<16x1xf32> to vector<16x16xf32>
      %161 = arith.subf %157, %160 : vector<16x16xf32>
      %162 = math.exp %161 : vector<16x16xf32>
      %cst_67 = arith.constant dense<0.000000e+00> : vector<16xf32>
      %163 = vector.multi_reduction <add>, %162, %cst_67 [1] : vector<16x16xf32> to vector<16xf32>
      %164 = vector.shape_cast %163 : vector<16xf32> to vector<16x1xf32>
      %165 = tpu.reciprocal %164 {approx = true} : vector<16x1xf32> -> vector<16x1xf32>
      %166 = vector.broadcast %165 : vector<16x1xf32> to vector<16x16xf32>
      %167 = arith.mulf %162, %166 : vector<16x16xf32>
      %168 = arith.truncf %167 : vector<16x16xf32> to vector<16x16xbf16>
      %cst_68 = arith.constant dense<0.000000e+00> : vector<16x32xf32>
      %169 = tpu.matmul %168, %156, %cst_68 {dimension_numbers = #tpu.dot_dimension_numbers<[1], [0], [0], [1], [0, 0, 1, 1], [], []>} : vector<16x16xbf16>, vector<16x32xbf16>, vector<16x32xf32> -> vector<16x32xf32>
      %170 = vector.extract_strided_slice %58 {offsets = [16, 64], sizes = [16, 32], strides = [1, 1]} : vector<32x128xbf16> to vector<16x32xbf16>
      %171 = vector.extract_strided_slice %64 {offsets = [16, 64], sizes = [16, 32], strides = [1, 1]} : vector<32x128xbf16> to vector<16x32xbf16>
      %172 = vector.extract_strided_slice %70 {offsets = [16, 64], sizes = [16, 32], strides = [1, 1]} : vector<32x128xbf16> to vector<16x32xbf16>
      %cst_69 = arith.constant dense<0.000000e+00> : vector<16x16xf32>
      %173 = tpu.matmul %170, %171, %cst_69 {dimension_numbers = #tpu.dot_dimension_numbers<[1], [1], [0], [0], [0, 0, 1, 0], [], []>} : vector<16x32xbf16>, vector<16x32xbf16>, vector<16x16xf32> -> vector<16x16xf32>
      %cst_70 = arith.constant dense<0xFF800000> : vector<16xf32>
      %174 = vector.multi_reduction <maximumf>, %173, %cst_70 [1] : vector<16x16xf32> to vector<16xf32>
      %175 = vector.shape_cast %174 : vector<16xf32> to vector<16x1xf32>
      %176 = vector.broadcast %175 : vector<16x1xf32> to vector<16x16xf32>
      %177 = arith.subf %173, %176 : vector<16x16xf32>
      %178 = math.exp %177 : vector<16x16xf32>
      %cst_71 = arith.constant dense<0.000000e+00> : vector<16xf32>
      %179 = vector.multi_reduction <add>, %178, %cst_71 [1] : vector<16x16xf32> to vector<16xf32>
      %180 = vector.shape_cast %179 : vector<16xf32> to vector<16x1xf32>
      %181 = tpu.reciprocal %180 {approx = true} : vector<16x1xf32> -> vector<16x1xf32>
      %182 = vector.broadcast %181 : vector<16x1xf32> to vector<16x16xf32>
      %183 = arith.mulf %178, %182 : vector<16x16xf32>
      %184 = arith.truncf %183 : vector<16x16xf32> to vector<16x16xbf16>
      %cst_72 = arith.constant dense<0.000000e+00> : vector<16x32xf32>
      %185 = tpu.matmul %184, %172, %cst_72 {dimension_numbers = #tpu.dot_dimension_numbers<[1], [0], [0], [1], [0, 0, 1, 1], [], []>} : vector<16x16xbf16>, vector<16x32xbf16>, vector<16x32xf32> -> vector<16x32xf32>
      %186 = vector.extract_strided_slice %58 {offsets = [16, 96], sizes = [16, 32], strides = [1, 1]} : vector<32x128xbf16> to vector<16x32xbf16>
      %187 = vector.extract_strided_slice %64 {offsets = [16, 96], sizes = [16, 32], strides = [1, 1]} : vector<32x128xbf16> to vector<16x32xbf16>
      %188 = vector.extract_strided_slice %70 {offsets = [16, 96], sizes = [16, 32], strides = [1, 1]} : vector<32x128xbf16> to vector<16x32xbf16>
      %cst_73 = arith.constant dense<0.000000e+00> : vector<16x16xf32>
      %189 = tpu.matmul %186, %187, %cst_73 {dimension_numbers = #tpu.dot_dimension_numbers<[1], [1], [0], [0], [0, 0, 1, 0], [], []>} : vector<16x32xbf16>, vector<16x32xbf16>, vector<16x16xf32> -> vector<16x16xf32>
      %cst_74 = arith.constant dense<0xFF800000> : vector<16xf32>
      %190 = vector.multi_reduction <maximumf>, %189, %cst_74 [1] : vector<16x16xf32> to vector<16xf32>
      %191 = vector.shape_cast %190 : vector<16xf32> to vector<16x1xf32>
      %192 = vector.broadcast %191 : vector<16x1xf32> to vector<16x16xf32>
      %193 = arith.subf %189, %192 : vector<16x16xf32>
      %194 = math.exp %193 : vector<16x16xf32>
      %cst_75 = arith.constant dense<0.000000e+00> : vector<16xf32>
      %195 = vector.multi_reduction <add>, %194, %cst_75 [1] : vector<16x16xf32> to vector<16xf32>
      %196 = vector.shape_cast %195 : vector<16xf32> to vector<16x1xf32>
      %197 = tpu.reciprocal %196 {approx = true} : vector<16x1xf32> -> vector<16x1xf32>
      %198 = vector.broadcast %197 : vector<16x1xf32> to vector<16x16xf32>
      %199 = arith.mulf %194, %198 : vector<16x16xf32>
      %200 = arith.truncf %199 : vector<16x16xf32> to vector<16x16xbf16>
      %cst_76 = arith.constant dense<0.000000e+00> : vector<16x32xf32>
      %201 = tpu.matmul %200, %188, %cst_76 {dimension_numbers = #tpu.dot_dimension_numbers<[1], [0], [0], [1], [0, 0, 1, 1], [], []>} : vector<16x16xbf16>, vector<16x32xbf16>, vector<16x32xf32> -> vector<16x32xf32>
      %202 = tpu.concatenate %153, %169, %185, %201 in 1 : vector<16x32xf32>, vector<16x32xf32>, vector<16x32xf32>, vector<16x32xf32> -> vector<16x128xf32>
      %203 = arith.truncf %202 : vector<16x128xf32> to vector<16x128xbf16>
      %c16 = arith.constant 16 : index
      %c0_77 = arith.constant 0 : index
      %204 = vector.load %arg20[%c16, %c0_77] : memref<32x128xbf16, #tpu.memory_space<vmem>>, vector<16x128xbf16>
      tpu.vector_store %arg20[%c16, %c0_77], %203 {strides = array<i32>} : memref<32x128xbf16, #tpu.memory_space<vmem>>, vector<16x128xbf16>,
      %c0_78 = arith.constant 0 : index
      %c0_79 = arith.constant 0 : index
      %205 = vector.load %arg20[%c0_78, %c0_79] : memref<32x128xbf16, #tpu.memory_space<vmem>>, vector<32x128xbf16>
      %c0_80 = arith.constant 0 : index
      %c0_81 = arith.constant 0 : index
      %206 = vector.load %arg11[%c0_80, %c0_81] : memref<128x128xbf16, #tpu.memory_space<vmem>>, vector<128x128xbf16>
      %cst_82 = arith.constant dense<0.000000e+00> : vector<32x128xf32>
      %207 = tpu.matmul %205, %206, %cst_82 {dimension_numbers = #tpu.dot_dimension_numbers<[1], [0], [0], [1], [0, 0, 1, 1], [], []>} : vector<32x128xbf16>, vector<128x128xbf16>, vector<32x128xf32> -> vector<32x128xf32>
      %c0_83 = arith.constant 0 : index
      %c0_84 = arith.constant 0 : index
      %208 = vector.load %arg12[%c0_83, %c0_84] : memref<1x128xf32, #tpu.memory_space<vmem>>, vector<1x128xf32>
      %209 = vector.broadcast %208 : vector<1x128xf32> to vector<32x128xf32>
      %210 = arith.addf %207, %209 : vector<32x128xf32>
      %211 = arith.addf %27, %210 : vector<32x128xf32>
      %c0_85 = arith.constant 0 : index
      %c0_86 = arith.constant 0 : index
      %212 = vector.load %arg13[%c0_85, %c0_86] : memref<1x128xf32, #tpu.memory_space<vmem>>, vector<1x128xf32>
      %c0_87 = arith.constant 0 : index
      %c0_88 = arith.constant 0 : index
      %213 = vector.load %arg14[%c0_87, %c0_88] : memref<1x128xf32, #tpu.memory_space<vmem>>, vector<1x128xf32>
      %cst_89 = arith.constant dense<0.000000e+00> : vector<32xf32>
      %214 = vector.multi_reduction <add>, %211, %cst_89 [1] : vector<32x128xf32> to vector<32xf32>
      %215 = vector.shape_cast %214 : vector<32xf32> to vector<32x1xf32>
      %cst_90 = arith.constant 1.280000e+02 : f32
      %216 = vector.broadcast %cst_90 : f32 to vector<32x1xf32>
      %217 = arith.divf %215, %216 : vector<32x1xf32>
      %218 = vector.broadcast %217 : vector<32x1xf32> to vector<32x128xf32>
      %219 = arith.subf %211, %218 : vector<32x128xf32>
      %220 = arith.mulf %219, %219 : vector<32x128xf32>
      %cst_91 = arith.constant dense<0.000000e+00> : vector<32xf32>
      %221 = vector.multi_reduction <add>, %220, %cst_91 [1] : vector<32x128xf32> to vector<32xf32>
      %222 = vector.shape_cast %221 : vector<32xf32> to vector<32x1xf32>
      %cst_92 = arith.constant 1.280000e+02 : f32
      %223 = vector.broadcast %cst_92 : f32 to vector<32x1xf32>
      %224 = arith.divf %222, %223 : vector<32x1xf32>
      %225 = vector.broadcast %217 : vector<32x1xf32> to vector<32x128xf32>
      %226 = arith.subf %211, %225 : vector<32x128xf32>
      %cst_93 = arith.constant 9.99999974E-6 : f32
      %227 = vector.broadcast %cst_93 : f32 to vector<32x1xf32>
      %228 = arith.addf %224, %227 : vector<32x1xf32>
      %229 = math.rsqrt %228 : vector<32x1xf32>
      %230 = vector.broadcast %229 : vector<32x1xf32> to vector<32x128xf32>
      %231 = arith.mulf %226, %230 : vector<32x128xf32>
      %232 = vector.broadcast %212 : vector<1x128xf32> to vector<32x128xf32>
      %233 = arith.mulf %231, %232 : vector<32x128xf32>
      %234 = vector.broadcast %213 : vector<1x128xf32> to vector<32x128xf32>
      %235 = arith.addf %233, %234 : vector<32x128xf32>
      %236 = arith.truncf %235 : vector<32x128xf32> to vector<32x128xbf16>
      %c0_94 = arith.constant 0 : index
      %c0_95 = arith.constant 0 : index
      %237 = vector.load %arg21[%c0_94, %c0_95] : memref<32x128xbf16, #tpu.memory_space<vmem>>, vector<32x128xbf16>
      tpu.vector_store %arg21[%c0_94, %c0_95], %236 {strides = array<i32>} : memref<32x128xbf16, #tpu.memory_space<vmem>>, vector<32x128xbf16>,
      %c0_96 = arith.constant 0 : index
      %c0_97 = arith.constant 0 : index
      %238 = vector.load %arg18[%c0_96, %c0_97] : memref<1x128xf32, #tpu.memory_space<vmem>>, vector<1x128xf32>
      %239 = vector.broadcast %238 : vector<1x128xf32> to vector<32x128xf32>
      %240 = arith.addf %211, %239 : vector<32x128xf32>
      %c0_98 = arith.constant 0 : index
      %c0_99 = arith.constant 0 : index
      %241 = vector.load %arg22[%c0_98, %c0_99] : memref<32x128xf32, #tpu.memory_space<vmem>>, vector<32x128xf32>
      tpu.vector_store %arg22[%c0_98, %c0_99], %240 {strides = array<i32>} : memref<32x128xf32, #tpu.memory_space<vmem>>, vector<32x128xf32>,
    } else {
    }
    %c0 = arith.constant 0 : index
    %c0_1 = arith.constant 0 : index
    %3 = vector.load %arg21[%c0, %c0_1] : memref<32x128xbf16, #tpu.memory_space<vmem>>, vector<32x128xbf16>
    %c0_2 = arith.constant 0 : index
    %c0_3 = arith.constant 0 : index
    %4 = vector.load %arg15[%c0_2, %c0_3] : memref<128x256xbf16, #tpu.memory_space<vmem>>, vector<128x256xbf16>
    %cst = arith.constant dense<0.000000e+00> : vector<32x256xf32>
    %5 = tpu.matmul %3, %4, %cst {dimension_numbers = #tpu.dot_dimension_numbers<[1], [0], [0], [1], [0, 0, 1, 1], [], []>} : vector<32x128xbf16>, vector<128x256xbf16>, vector<32x256xf32> -> vector<32x256xf32>
    %c0_4 = arith.constant 0 : index
    %c0_5 = arith.constant 0 : index
    %6 = vector.load %arg16[%c0_4, %c0_5] : memref<1x256xf32, #tpu.memory_space<vmem>>, vector<1x256xf32>
    %7 = vector.broadcast %6 : vector<1x256xf32> to vector<32x256xf32>
    %8 = arith.addf %5, %7 : vector<32x256xf32>
    %cst_6 = arith.constant 1.702000e+00 : f32
    %9 = vector.broadcast %cst_6 : f32 to vector<32x256xf32>
    %10 = arith.mulf %9, %8 : vector<32x256xf32>
    %11 = arith.negf %10 : vector<32x256xf32>
    %12 = math.exp %11 : vector<32x256xf32>
    %cst_7 = arith.constant 1.000000e+00 : f32
    %13 = vector.broadcast %cst_7 : f32 to vector<32x256xf32>
    %14 = arith.addf %13, %12 : vector<32x256xf32>
    %15 = arith.divf %13, %14 : vector<32x256xf32>
    %16 = arith.mulf %8, %15 : vector<32x256xf32>
    %c0_8 = arith.constant 0 : index
    %c0_9 = arith.constant 0 : index
    %17 = vector.load %arg22[%c0_8, %c0_9] : memref<32x128xf32, #tpu.memory_space<vmem>>, vector<32x128xf32>
    %18 = arith.truncf %16 : vector<32x256xf32> to vector<32x256xbf16>
    %c0_10 = arith.constant 0 : index
    %c0_11 = arith.constant 0 : index
    %19 = vector.load %arg17[%c0_10, %c0_11] : memref<256x128xbf16, #tpu.memory_space<vmem>>, vector<256x128xbf16>
    %cst_12 = arith.constant dense<0.000000e+00> : vector<32x128xf32>
    %20 = tpu.matmul %18, %19, %cst_12 {dimension_numbers = #tpu.dot_dimension_numbers<[1], [0], [0], [1], [0, 0, 1, 1], [], []>} : vector<32x256xbf16>, vector<256x128xbf16>, vector<32x128xf32> -> vector<32x128xf32>
    %21 = arith.addf %17, %20 : vector<32x128xf32>
    %c0_13 = arith.constant 0 : index
    %c0_14 = arith.constant 0 : index
    %22 = vector.load %arg22[%c0_13, %c0_14] : memref<32x128xf32, #tpu.memory_space<vmem>>, vector<32x128xf32>
    tpu.vector_store %arg22[%c0_13, %c0_14], %21 {strides = array<i32>} : memref<32x128xf32, #tpu.memory_space<vmem>>, vector<32x128xf32>,
    %c1_i32 = arith.constant 1 : i32
    %23 = arith.cmpi eq, %arg1, %c1_i32 : i32
    %24 = arith.extui %23 : i1 to i32
    %c0_i32_15 = arith.constant 0 : i32
    %25 = arith.cmpi ne, %24, %c0_i32_15 : i32
    scf.if %25 {
      %c0_16 = arith.constant 0 : index
      %c0_17 = arith.constant 0 : index
      %26 = vector.load %arg22[%c0_16, %c0_17] : memref<32x128xf32, #tpu.memory_space<vmem>>, vector<32x128xf32>
      %27 = vector.shape_cast %26 : vector<32x128xf32> to vector<2x16x128xf32>
      %c0_18 = arith.constant 0 : index
      %c0_19 = arith.constant 0 : index
      %c0_20 = arith.constant 0 : index
      %28 = vector.load %arg19[%c0_18, %c0_19, %c0_20] : memref<2x16x128xf32, #tpu.memory_space<vmem>>, vector<2x16x128xf32>
      tpu.vector_store %arg19[%c0_18, %c0_19, %c0_20], %27 {strides = array<i32>} : memref<2x16x128xf32, #tpu.memory_space<vmem>>, vector<2x16x128xf32>,
    } else {
    }
    return
  }
  func.func @transform_0(%arg0: i32, %arg1: i32) -> (i32, i32, i32) {
    %c0_i32 = arith.constant 0 : i32
    %c0_i32_0 = arith.constant 0 : i32
    %c0_i32_1 = arith.constant 0 : i32
    return %arg0, %c0_i32, %c0_i32_0 : i32, i32, i32
  }
  func.func @transform_1(%arg0: i32, %arg1: i32) -> (i32, i32) {
    %c0_i32 = arith.constant 0 : i32
    %c0_i32_0 = arith.constant 0 : i32
    %c0_i32_1 = arith.constant 0 : i32
    return %c0_i32, %c0_i32_0 : i32, i32
  }
  func.func @transform_2(%arg0: i32, %arg1: i32) -> (i32, i32) {
    %c0_i32 = arith.constant 0 : i32
    %c0_i32_0 = arith.constant 0 : i32
    %c0_i32_1 = arith.constant 0 : i32
    return %c0_i32, %c0_i32_0 : i32, i32
  }
  func.func @transform_3(%arg0: i32, %arg1: i32) -> (i32, i32) {
    %c0_i32 = arith.constant 0 : i32
    %c0_i32_0 = arith.constant 0 : i32
    %c0_i32_1 = arith.constant 0 : i32
    return %c0_i32, %c0_i32_0 : i32, i32
  }
  func.func @transform_4(%arg0: i32, %arg1: i32) -> (i32, i32) {
    %c0_i32 = arith.constant 0 : i32
    %c0_i32_0 = arith.constant 0 : i32
    %c0_i32_1 = arith.constant 0 : i32
    return %c0_i32, %c0_i32_0 : i32, i32
  }
  func.func @transform_5(%arg0: i32, %arg1: i32) -> (i32, i32) {
    %c0_i32 = arith.constant 0 : i32
    %c0_i32_0 = arith.constant 0 : i32
    %c0_i32_1 = arith.constant 0 : i32
    return %c0_i32, %c0_i32_0 : i32, i32
  }
  func.func @transform_6(%arg0: i32, %arg1: i32) -> (i32, i32) {
    %c0_i32 = arith.constant 0 : i32
    %c0_i32_0 = arith.constant 0 : i32
    %c0_i32_1 = arith.constant 0 : i32
    return %c0_i32, %c0_i32_0 : i32, i32
  }
  func.func @transform_7(%arg0: i32, %arg1: i32) -> (i32, i32) {
    %c0_i32 = arith.constant 0 : i32
    %c0_i32_0 = arith.constant 0 : i32
    %c0_i32_1 = arith.constant 0 : i32
    return %c0_i32, %c0_i32_0 : i32, i32
  }
  func.func @transform_8(%arg0: i32, %arg1: i32) -> (i32, i32) {
    %c0_i32 = arith.constant 0 : i32
    %c0_i32_0 = arith.constant 0 : i32
    %c0_i32_1 = arith.constant 0 : i32
    return %c0_i32, %c0_i32_0 : i32, i32
  }
  func.func @transform_9(%arg0: i32, %arg1: i32) -> (i32, i32) {
    %c0_i32 = arith.constant 0 : i32
    %c0_i32_0 = arith.constant 0 : i32
    %c0_i32_1 = arith.constant 0 : i32
    return %c0_i32, %c0_i32_0 : i32, i32
  }
  func.func @transform_10(%arg0: i32, %arg1: i32) -> (i32, i32) {
    %c0_i32 = arith.constant 0 : i32
    %c0_i32_0 = arith.constant 0 : i32
    %c0_i32_1 = arith.constant 0 : i32
    return %c0_i32, %c0_i32_0 : i32, i32
  }
  func.func @transform_11(%arg0: i32, %arg1: i32) -> (i32, i32) {
    %c0_i32 = arith.constant 0 : i32
    %c0_i32_0 = arith.constant 0 : i32
    %c0_i32_1 = arith.constant 0 : i32
    return %c0_i32, %c0_i32_0 : i32, i32
  }
  func.func @transform_12(%arg0: i32, %arg1: i32) -> (i32, i32) {
    %c0_i32 = arith.constant 0 : i32
    %c0_i32_0 = arith.constant 0 : i32
    %c0_i32_1 = arith.constant 0 : i32
    return %c0_i32, %c0_i32_0 : i32, i32
  }
  func.func @transform_13(%arg0: i32, %arg1: i32) -> (i32, i32) {
    %c0_i32 = arith.constant 0 : i32
    %c0_i32_0 = arith.constant 0 : i32
    return %c0_i32, %arg1 : i32, i32
  }
  func.func @transform_14(%arg0: i32, %arg1: i32) -> (i32, i32) {
    %c0_i32 = arith.constant 0 : i32
    %c0_i32_0 = arith.constant 0 : i32
    return %c0_i32, %arg1 : i32, i32
  }
  func.func @transform_15(%arg0: i32, %arg1: i32) -> (i32, i32) {
    %c0_i32 = arith.constant 0 : i32
    %c0_i32_0 = arith.constant 0 : i32
    return %arg1, %c0_i32 : i32, i32
  }
  func.func @transform_16(%arg0: i32, %arg1: i32) -> (i32, i32) {
    %c0_i32 = arith.constant 0 : i32
    %c0_i32_0 = arith.constant 0 : i32
    %c0_i32_1 = arith.constant 0 : i32
    return %c0_i32, %c0_i32_0 : i32, i32
  }
  func.func @transform_17(%arg0: i32, %arg1: i32) -> (i32, i32, i32) {
    %c0_i32 = arith.constant 0 : i32
    %c0_i32_0 = arith.constant 0 : i32
    %c0_i32_1 = arith.constant 0 : i32
    return %arg0, %c0_i32, %c0_i32_0 : i32, i32, i32
  }
}

</mosaic_0001>

<bundles_post_ra>
// kernel: tpu_custom_call.1
= control target key start
LH: loop header
LB: loop body
LE: loop exit
PB: predicated region body
PF: predicated region fallthrough
CT: control target
= control target key end

     0   :  { %s4826_s0 = inlined_call_operand.hbm [shape: f32[4,16,128], index: 0, kind: input, shape index: {}]   ;;  %s4827_s1 = inlined_call_operand.hbm [shape: f32[1,128], index: 1, kind: input, shape index: {}]   ;;  %s4828_s2 = inlined_call_operand.vmem [shape: f32[1,128], index: 2, kind: input, shape index: {}]   ;;  %s4829_s3 = inlined_call_operand.hbm [shape: bf16[128,128], index: 3, kind: input, shape index: {}]   ;;  %s4830_s4 = inlined_call_operand.vmem [shape: f32[1,128], index: 4, kind: input, shape index: {}]   ;;  %s4831_s5 = inlined_call_operand.hbm [shape: bf16[128,128], index: 5, kind: input, shape index: {}]   ;;  %s4832_s6 = inlined_call_operand.vmem [shape: f32[1,128], index: 6, kind: input, shape index: {}]   ;;  %s4833_s7 = inlined_call_operand.hbm [shape: bf16[128,128], index: 7, kind: input, shape index: {}]   ;;  %s4834_s8 = inlined_call_operand.hbm [shape: f32[1,128], index: 8, kind: input, shape index: {}]   ;;  %s4835_s9 = inlined_call_operand.hbm [shape: bf16[128,128], index: 9, kind: input, shape index: {}]   ;;  %s4836_s10 = inlined_call_operand.vmem [shape: f32[1,128], index: 10, kind: input, shape index: {}]   ;;  %s4837_s11 = inlined_call_operand.vmem [shape: f32[1,128], index: 11, kind: input, shape index: {}]   ;;  %s4838_s12 = inlined_call_operand.vmem [shape: f32[1,128], index: 12, kind: input, shape index: {}]   ;;  %s4839_s13 = inlined_call_operand.hbm [shape: bf16[128,512], index: 13, kind: input, shape index: {}]   ;;  %s4840_s14 = inlined_call_operand.vmem [shape: f32[1,512], index: 14, kind: input, shape index: {}]   ;;  %s4841_s15 = inlined_call_operand.hbm [shape: bf16[512,128], index: 15, kind: input, shape index: {}]   ;;  %s4842_s16 = inlined_call_operand.vmem [shape: f32[1,128], index: 16, kind: input, shape index: {}]   ;;  %s4843_s17 = inlined_call_operand.hbm [shape: f32[4,16,128], index: 17, kind: output, shape index: {}]  }
   0x1   :  { %4864 = sst [smem:[#allocation40_spill]] %s4826_s0 }
   0x2   :  { %4865 = sst [smem:[#allocation41_spill]] %s4827_s1 }
   0x3   :  { %4866 = sst [smem:[#allocation42_spill]] %s4828_s2 }
   0x4   :  { %4867 = sst [smem:[#allocation43_spill]] %s4829_s3 }
   0x5   :  { %4868 = sst [smem:[#allocation44_spill]] %s4830_s4 }
   0x6   :  { %4869 = sst [smem:[#allocation45_spill]] %s4831_s5 }
   0x7   :  { %4870 = sst [smem:[#allocation46_spill]] %s4832_s6 }
   0x8   :  { %4871 = sst [smem:[#allocation47_spill]] %s4833_s7 }
   0x9   :  { %4872 = sst [smem:[#allocation48_spill]] %s4834_s8 }
   0xa   :  { %4873 = sst [smem:[#allocation49_spill]] %s4835_s9 }
   0xb   :  { %4874 = sst [smem:[#allocation50_spill]] %s4836_s10 }
   0xc   :  { %4875 = sst [smem:[#allocation51_spill]] %s4837_s11 }
   0xd   :  { %4876 = sst [smem:[#allocation52_spill]] %s4838_s12 }
   0xe   :  { %4877 = sst [smem:[#allocation53_spill]] %s4839_s13 }
   0xf   :  { %4878 = sst [smem:[#allocation54_spill]] %s4840_s14 }
  0x10   :  { %4879 = sst [smem:[#allocation55_spill]] %s4842_s16 }
  0x11   :  { %4880 = sst [smem:[#allocation56_spill]] %s4843_s17 }
  0x12   :  { %22 = vsyncpa [#allocation6], 0 }
  0x13   :  { %24 = vsyncpa [#allocation6 + $0x1], 0 }
  0x14   :  { %25 = vsyncpa [#allocation9], 0 }
  0x15   :  { %26 = vsyncpa [#allocation12], 0 }
  0x16   :  { %27 = vsyncpa [#allocation15], 0 }
  0x17   :  { %28 = vsyncpa [#allocation18], 0 }
  0x18   :  { %30 = vsyncpa [#allocation18 + $0x1], 0 }
  0x19   :  { %31 = vsyncpa [#allocation7], 0 }
  0x1a   :  { %33 = vsyncpa [#allocation7 + $0x1], 0  ;;  %s4035_s24 = smov 0   ;;  %s4037_s25 = smov 0  }
  0x1b   :  { %s4039_s26 = smov 0   ;;  %s4041_s27 = smov 0  }
  0x1c   :  { %s4043_s28 = smov 0   ;;  %s4045_s29 = smov 0  }
  0x1d   :  { %s4047_s0 = smov 0   ;;  %s4049_s30 = smov 0  }
  0x1e   :  { %s4051_s18 = smov 0   ;;  %s4053_s19 = smov 0  }
  0x1f   :  { %s4055_s1 = smov 0  }
  0x20 LB: > { %4881 = sst [smem:[#allocation27_spill]] %s3894_s26  ;;  %s4091_s20 = sadd.s32 4294967295, %s3926_s1   ;;  %s3926_s1 = sphi %s4055_s1, %s39_s1   ;;  %s3922_s19 = sphi %s4053_s19, %s4953_s19   ;;  %s3918_s18 = sphi %s4051_s18, %s4959_s18   ;;  %s3914_s30 = sphi %s4049_s30, %s4951_s30   ;;  %s3910_s0 = sphi %s4047_s0, %s4958_s0   ;;  %s3906_s29 = sphi %s4045_s29, %s4950_s29   ;;  %s3902_s28 = sphi %s4043_s28, %s4957_s28   ;;  %s3898_s27 = sphi %s4041_s27, %s4956_s27   ;;  %s3894_s26 = sphi %s4039_s26, %s4948_s26   ;;  %s3890_s25 = sphi %s4037_s25, %s4955_s25   ;;  %s3886_s24 = sphi %s4035_s24, %s4954_s24  }
  0x21   : > { %4882 = sst [smem:[#allocation28_spill]] %s3898_s27  ;;  %p2747_p0 = scmp.ge.s32.totalorder %s3926_s1, 1 }
  0x22   : > { %4883 = sst [smem:[#allocation29_spill]] %s3906_s29  ;;  %p72_p1 = scmp.eq.s32.totalorder %s4091_s20, 0 }
  0x23   : > { %4884 = sst [smem:[#allocation30_spill]] %s3910_s0  ;;  %p459_p2 = scmp.lt.s32.totalorder %s3926_s1, 5 }
  0x24   : > { %4885 = sst [smem:[#allocation31_spill]] %s3914_s30  ;;  %s3928_s12 = smov [#allocation8]  }
  0x25   : > { %4886 = sst [smem:[#allocation32_spill]] %s3922_s19  ;;  %p4099_p3 = pnand %p2747_p0, %p459_p2 }
  0x26   : > { %s4887_s23 = sld [smem:[#allocation41_spill]]  ;;  %s473_s11 = sshll.u32 %s3928_s12, 4  ;;  %s474_s11 = int_to_ptr.vmem [resolvable:$true] %s473_s11 }
  0x27   : > { %p3209_p4 = pneg %p4099_p3  ;;  %s4890_s5 = sld [smem:[#allocation45_spill]] }
  0x28   : > { %s3929_s12 = smov [#allocation11]   ;;  %s4891_s8 = sld [smem:[#allocation48_spill]] }
  0x29   : > { %p4107_p5 = pnand %p3209_p4, %p72_p1  ;;  %s504_s22 = sshll.u32 %s3929_s12, 4  ;;  %s505_s22 = int_to_ptr.vmem [resolvable:$true] %s504_s22 }
  0x2a   : > { %s4845_s6 = smov 64   ;;  %s4847_s10 = smov 4  }
  0x2b   : > { %s48_s4 = sadd.s32 1, %s3918_s18  ;;  %p66_p7 = scmp.eq.s32.totalorder %s3926_s1, 0 }
  0x2c   : > { %s471_s17 = sshll.u32 %s4887_s23, 4  ;;  %p4127_p6 = scmp.ge.s32.totalorder %s48_s4, 2  ;;  %s472_s17 = int_to_ptr.hbm [resolvable:$true] %s471_s17 }
  0x2d   : > { %s502_s21 = sshll.u32 %s4890_s5, 4  ;;  %s336_s23 = sadd.s32 1, %s3894_s26  ;;  %s503_s21 = int_to_ptr.hbm [resolvable:$true] %s502_s21 }
  0x2e   : > { %3212 = dma.hbm_to_vmem [thread:$0]  (!%p4107_p5), %s472_s17, 16, %s474_s11, [#allocation9]  }
  0x2f   : > { %s534_s2 = sshll.u32 %s4891_s8, 4  ;;  %s3932_s11 = smov [#allocation14]   ;;  %s535_s2 = int_to_ptr.hbm [resolvable:$true] %s534_s2 }
  0x30   : > { %3218 = dma.hbm_to_vmem [thread:$0]  (!%p4107_p5), %s503_s21, 1024, %s505_s22, [#allocation12], %s4845_s6, %s4845_s6, %s4847_s10  }
  0x31   : > { %s536_s17 = sshll.u32 %s3932_s11, 4  ;;  %p343_p8 = scmp.ne.s32.totalorder %s3894_s26, %s3890_s25  ;;  %s537_s17 = int_to_ptr.vmem [resolvable:$true] %s536_s17 }
  0x32   : > { %3224 = dma.hbm_to_vmem [thread:$0]  (!%p4107_p5), %s535_s2, 16, %s537_s17, [#allocation15]  }
  0x33   : > { %s4961_s4 = smov (%p4127_p6, %s48_s4), 0  ;;  %p4141_p9 = por %p343_p8, %p66_p7 }
  0x34   : > { %4893 = sst [smem:[#allocation33_spill]] %s4961_s4  ;;  %p349_p10 = scmp.ne.s32.totalorder %s3890_s25, %s3886_s24 }
  0x35   : > { %s333_s2 = ssub.s32 %s3918_s18, %s4961_s4  ;;  %p4852_p11 = scmp.lt.s32.totalorder %s3926_s1, 4 }
  0x36   : > { %p334_p12 = scmp.eq.s32.totalorder %s333_s2, 0  ;;  %p4152_p13 = por %p349_p10, %p72_p1 }
  0x37   : > { %s596_s17 = sand.u32 1, %s3926_s1   ;;  %s598_s6 = sand.u32 1, %s3894_s26  }
  0x38   : > { %s4895_s22 = scalar_select %p4152_p13, 1, 0 }
  0x39   : > { %s4157_s11 = scalar_select %p334_p12, %s3894_s26, %s336_s23  }
  0x3a   : > { %4896 = sst [smem:[#allocation34_spill]] %s4895_s22  ;;  %s4161_s10 = sshll.u32 %s598_s6, 7 }
  0x3b   : > { %4897 = sst [smem:[#allocation35_spill]] %s4157_s11  ;;  %s3083_s5 = sshll.u32 %s3918_s18, 3 }
  0x3c   : > { %s4898_s13 = sld [smem:[#allocation53_spill]]  ;;  %s600_s4 = scalar_lea.vmem [#allocation17], %s4161_s10 }
  0x3d   : > { %s608_s0 = sshll.u32 %s600_s4, 4  ;;  %p4172_p0 = pnand %p4852_p11, %p4141_p9  ;;  %s609_s0 = int_to_ptr.vmem [resolvable:$true] %s608_s0 }
  0x3e   : > { %s4900_s3 = sld [smem:[#allocation43_spill]]  ;;  %s4179_s8 = scalar_lea.sflag [#allocation18], %s596_s17 }
  0x3f   : > { %s4854_s4 = smov 8   ;;  %s4901_s7 = sld [smem:[#allocation47_spill]] }
  0x40   : > { %s3936_s11 = smov [#allocation10]   ;;  %s4902_s17 = smov 4  }
  0x41   : > { %s487_s6 = sshll.u32 %s3936_s11, 4  ;;  %s4904_s9 = sld [smem:[#allocation49_spill]]  ;;  %s488_s6 = int_to_ptr.vmem [resolvable:$true] %s487_s6 }
  0x42   : > { %s605_s14 = scalar_lea.hbm %s4898_s13, %s3083_s5  ;;  %s3933_s5 = smov 256  }
  0x43   : > { %s606_s2 = sshll.u32 %s605_s14, 4  ;;  %s4853_s14 = smov 128   ;;  %s607_s2 = int_to_ptr.hbm [resolvable:$true] %s606_s2 }
  0x44   : > { %s485_s26 = sshll.u32 %s4900_s3, 4  ;;  %s4903_s3 = smov 64   ;;  %s486_s26 = int_to_ptr.hbm [resolvable:$true] %s485_s26 }
  0x45   : > { %3234 = dma.hbm_to_vmem [thread:$0]  (!%p4172_p0), %s607_s2, 2048, %s609_s0, %s4179_s8, %s3933_s5, %s4853_s14, %s4854_s4  }
  0x46   : > { %s519_s13 = sshll.u32 %s4901_s7, 4  ;;  %s3937_s0 = smov [#allocation13]   ;;  %s520_s13 = int_to_ptr.hbm [resolvable:$true] %s519_s13 }
  0x47   : > { %3215 = dma.hbm_to_vmem [thread:$0]  (!%p4107_p5), %s486_s26, 1024, %s488_s6, [#allocation9], %s4903_s3, %s4903_s3, %s4902_s17  }
  0x48   : > { %s521_s2 = sshll.u32 %s3937_s0, 4  ;;  %s545_s24 = sshll.u32 %s4904_s9, 4  ;;  %s522_s2 = int_to_ptr.vmem [resolvable:$true] %s521_s2  ;;  %s546_s24 = int_to_ptr.hbm [resolvable:$true] %s545_s24 }
  0x49   : > { %3221 = dma.hbm_to_vmem [thread:$0]  (!%p4107_p5), %s520_s13, 1024, %s522_s2, [#allocation12], %s4903_s3, %s4903_s3, %s4902_s17  }
  0x4a   : > { %s3938_s11 = smov [#allocation16]   ;;  %s2746_s6 = sadd.s32 4294967294, %s3926_s1  }
  0x4b   : > { %s547_s26 = sshll.u32 %s3938_s11, 4  ;;  %s51_s0 = sadd.s32 1, %s3922_s19  ;;  %s548_s26 = int_to_ptr.vmem [resolvable:$true] %s547_s26 }
  0x4c   : > { %3227 = dma.hbm_to_vmem [thread:$0]  (!%p4107_p5), %s546_s24, 1024, %s548_s26, [#allocation15], %s4903_s3, %s4903_s3, %s4902_s17  }
  0x4d   : > { %s58_s5 = sadd.s32 1, %s3906_s29  ;;  %s4963_s0 = smov (!%p4127_p6, %s51_s0), %s3922_s19 }
  0x4e   : > { %p65_p2 = scmp.ne.s32.totalorder %s3906_s29, %s3902_s28  ;;  %p71_p4 = scmp.ne.s32.totalorder %s3902_s28, %s3898_s27 }
  0x4f   : > { %p53_p8 = scmp.ge.s32.totalorder %s4963_s0, 2  ;;  %p446_p9 = scmp.eq.s32.totalorder %s4091_s20, 3 }
  0x50   : > { %p4220_p10 = por %p66_p7, %p65_p2  ;;  %p4226_p12 = por %p72_p1, %p71_p4 }
  0x51   : > { %s4965_s0 = smov (%p53_p8, %s4963_s0), 0  ;;  %p4232_p5 = por %p446_p9, %p65_p2 }
  0x52   : > { %4907 = sst [smem:[#allocation36_spill]] %s4965_s0  ;;  %p452_p6 = scmp.eq.s32.totalorder %s2746_s6, 3 }
  0x53   : > { %s4908_s12 = scalar_select %p4232_p5, 1, 0 }
  0x54   : > { %s55_s2 = ssub.s32 %s3922_s19, %s4965_s0  ;;  %s573_s21 = sand.u32 1, %s3906_s29  }
  0x55   : > { %4909 = sst [smem:[#allocation37_spill]] %s4908_s12  ;;  %p56_p7 = scmp.eq.s32.totalorder %s55_s2, 0 }
  0x56   : > { %p4239_p11 = por %p452_p6, %p71_p4  ;;  %s2755_s11 = sshll.u32 %s573_s21, 5 }
  0x57   : > { %s4244_s26 = scalar_select %p56_p7, %s3906_s29, %s58_s5  }
  0x58   : > { %s4910_s24 = scalar_select %p4239_p11, 1, 0 }
  0x59   : > { %4912 = sst [smem:[#allocation39_spill]] %s4244_s26  ;;  %s3082_s14 = sshll.u32 %s3922_s19, 5 }
  0x5a   : > { %4911 = sst [smem:[#allocation38_spill]] %s4910_s24  ;;  %s577_s12 = scalar_lea.vmem [#allocation5], %s2755_s11 }
  0x5b   : > { %s4913_s9 = sld [smem:[#allocation40_spill]]  ;;  %s586_s6 = sshll.u32 %s577_s12, 4  ;;  %s587_s6 = int_to_ptr.vmem [resolvable:$true] %s586_s6 }
  0x5c   : > { %p4914_p2 = scmp.lt.s32.totalorder %s3926_s1, 4  ;;  %s3084_s2 = sshll.u32 %s3918_s18, 7 }
  0x5d   : > { %s635_s5 = scalar_lea.hbm %s4841_s15, %s3084_s2  ;;  %s574_s19 = scalar_lea.sflag [#allocation6], %s573_s21 }
  0x5e   : > { %p3229_p4 = pnand %p4914_p2, %p4220_p10  ;;  %s4915_s26 = smov 8  }
  0x5f   : > { %s4916_s29 = smov 128   ;;  %s636_s7 = sshll.u32 %s635_s5, 4  ;;  %s637_s7 = int_to_ptr.hbm [resolvable:$true] %s636_s7 }
  0x60   : > { %650 = sbr.rel (%p4099_p3) target bundleno = 2739 (0xab3), region = 88 }
  0x61   : > { %s583_s27 = scalar_lea.hbm %s4913_s9, %s3082_s14  ;;  %s630_s9 = scalar_lea.vmem [#allocation19], %s4161_s10 }
  0x62   : > { %s584_s0 = sshll.u32 %s583_s27, 4  ;;  %s638_s14 = sshll.u32 %s630_s9, 4  ;;  %s585_s0 = int_to_ptr.hbm [resolvable:$true] %s584_s0  ;;  %s639_s14 = int_to_ptr.vmem [resolvable:$true] %s638_s14 }
  0x63   : > { %3231 = dma.hbm_to_vmem [thread:$0]  (!%p3229_p4), %s585_s0, 512, %s587_s6, %s574_s19, %s4916_s29, %s4916_s29, %s4915_s26  }
  0x64   : > { %3237 = dma.hbm_to_vmem [thread:$0]  (!%p4172_p0), %s637_s7, 2048, %s639_s14, %s4179_s8, %s4903_s3, %s4903_s3, %s4902_s17  }
  0x65   : > { %s4271_s27 = sand.u32 1, %s3902_s28  }
  0x66   : > { %s2766_s29 = sshll.u32 %s4271_s27, 5  ;;  %s653_s19 = scalar_lea.sflag [#allocation6], %s4271_s27 }
  0x67   : > { %s4275_s10 = scalar_lea.vmem [#allocation5], %s2766_s29 }
  0x68   : > { %3861 = dma.done.wait (%p4226_p12), %s653_s19, 512  }
  0x69   : > { %3863 = vsyncadd (%p4226_p12), %s653_s19, 4294966784 }
  0x6a   : > { %3865 = dma.done.wait (%p72_p1), [#allocation9], 1040  }
  0x6b   : > { %3867 = vsyncadd (%p72_p1), [#allocation9], 4294966256 }
  0x6c   : > { %3869 = dma.done.wait (%p72_p1), [#allocation12], 2048  }
  0x6d   : > { %3871 = vsyncadd (%p72_p1), [#allocation12], 4294965248 }
  0x6e   : > { %3873 = dma.done.wait (%p72_p1), [#allocation15], 1040  }
  0x6f   : > { %3875 = vsyncadd (%p72_p1), [#allocation15], 4294966256  ;;  %s692_s30 = sand.u32 1, %s4091_s20   ;;  %s694_s22 = sand.u32 1, %s3890_s25  }
  0x70   : > { %s2773_s23 = sshll.u32 %s694_s22, 7  ;;  %s693_s8 = scalar_lea.sflag [#allocation18], %s692_s30 }
  0x71   : > { %s4295_s4 = scalar_lea.vmem [#allocation17], %s2773_s23 }
  0x72   : > { %3877 = dma.done.wait (%p4152_p13), %s693_s8, 4096  }
  0x73   : > { %3879 = vsyncadd (%p4152_p13), %s693_s8, 4294963200  ;;  %s4918_s17 = sld [smem:[#allocation30_spill]]  ;;  %s4308_s21 = scalar_lea.vmem [#allocation19], %s2773_s23 }
  0x74   : > { %s4919_s12 = sld [smem:[#allocation54_spill]]  ;;  %s4310_s24 = scalar_lea.vmem [#allocation20], %s2766_s29 }
  0x79   : > { %s2776_s0 = sshll.u32 %s4918_s17, 1  ;;  %p2777_p1 = scmp.ne.s32.totalorder %s4918_s17, 0 }
  0x7a   : > { %p775_p3 = scmp.lt.s32.totalorder %s2776_s0, 3  ;;  %s4920_s6 = sld [smem:[#allocation42_spill]] (!%p2777_p1) }
  0x7b   : > { %785 = sbr.rel (%p2777_p1) target bundleno = 2340 (0x924), region = 128  ;;  %s4921_s7 = sld [smem:[#allocation44_spill]] (!%p2777_p1) }
  0x7c   : > { %s4967_s0 = smov (!%p775_p3, %s2776_s0), 3  ;;  %s3940_s9 = smov (!%p2777_p1), 64  }
  0x7d   : > { %s777_s20 = scalar_lea.vmem %s4919_s12, %s4967_s0  ;;  %s4922_s19 = sld [smem:[#allocation46_spill]] (!%p2777_p1) }
  0x7e   : > { %s3941_s3 = smov (!%p2777_p1), 96   ;;  %s3942_s30 = smov (!%p2777_p1), 32  }
  0x7f   : > { %s4923_s8 = sld [smem:[#allocation50_spill]] (!%p2777_p1) }
  0x80   : > { %v788_v0 = vld [vmem:[%s4275_s10 + $0x10] sm:$0xff]  ;;  %v786_v1 = vld [vmem:[%s4275_s10] sm:$0xff]  ;;  %v789_v2 = vld [vmem:[%s4275_s10 + $0x18] sm:$0xff]  ;;  %v3939_v4 = vmov 128.0   ;;  %vm1178_vm13 = vcmask 261120   ;;  %vm1199_vm14 = vcmask 130048  }
  0x81   : > { %796 = vadd.xlane.f32.xlu1 %v788_v0  ;;  %792 = vadd.xlane.f32.xlu0 %v786_v1  ;;  %v787_v3 = vld [vmem:[%s4275_s10 + $0x8] sm:$0xff]  ;;  %3400 = vrcp.f32 %v3939_v4  ;;  %v3092_v27 = vld [vmem:[#allocation10 + $0x38] sm:$0xff]  ;;  %v3091_v29 = vld [vmem:[#allocation10 + $0x30] sm:$0xff]  ;;  %vm1473_vm15 = vcmask 523264   ;;  %s4924_s16 = sld [smem:[#allocation55_spill]] }
  0x82   : > { %v3108_v28 = vld [vmem:[#allocation13 + $0x38] sm:$0xff]  ;;  %963 = vmatpush.bf16.msra.mxu1 %v3092_v27  ;;  %v3107_v30 = vld [vmem:[#allocation13 + $0x30] sm:$0xff]  ;;  %v3090_v31 = vld [vmem:[#allocation10 + $0x28] sm:$0xff]  ;;  %s4925_s11 = sld [smem:[#allocation51_spill]] }
  0x83   : > { %1145 = vmatpush.bf16.msra.mxu2 %v3108_v28  ;;  %v3106_v32 = vld [vmem:[#allocation13 + $0x28] sm:$0xff]  ;;  %v3089_v33 = vld [vmem:[#allocation10 + $0x20] sm:$0xff]  ;;  %v3088_v35 = vld [vmem:[#allocation10 + $0x18] sm:$0xff]  ;;  %s4926_s2 = sld [smem:[#allocation52_spill]] }
  0x84   : > { %v3105_v34 = vld [vmem:[#allocation13 + $0x20] sm:$0xff]  ;;  %v3104_v36 = vld [vmem:[#allocation13 + $0x18] sm:$0xff]  ;;  %v3087_v37 = vld [vmem:[#allocation10 + $0x10] sm:$0xff] }
  0x85   : > { %v3103_v38 = vld [vmem:[#allocation13 + $0x10] sm:$0xff]  ;;  %v3086_v39 = vld [vmem:[#allocation10 + $0x8] sm:$0xff]  ;;  %v3085_v44 = vld [vmem:[#allocation10] sm:$0xff] }
  0x86   : > { %964 = vmatpush.bf16.msra.mxu1 %v3091_v29  ;;  %v3102_v40 = vld [vmem:[#allocation13 + $0x8] sm:$0xff]  ;;  %v3101_v45 = vld [vmem:[#allocation13] sm:$0xff]  ;;  %v3100_v48 = vld [vmem:[#allocation11 + $0x38] sm:$0xff] }
  0x87   : > { %v3401_v5 = vpop.eup %3400  ;;  %1146 = vmatpush.bf16.msra.mxu2 %v3107_v30  ;;  %v3099_v54 = vld [vmem:[#allocation11 + $0x30] sm:$0xff]  ;;  %v3098_v59 = vld [vmem:[#allocation11 + $0x28] sm:$0xff]  ;;  %v3097_v62 = vld [vmem:[#allocation11 + $0x20] sm:$0xff] }
  0x88   : > { %v801_v6 = vmul.f32 128.0, %v3401_v5  ;;  %vm805_vm0 = vweird.f32 %v3401_v5  ;;  %v3392_v30 = vld [vmem:[%s4920_s6] ss:$0 sm:$0xff] }
  0x89   : > { %798 = vadd.xlane.f32.xlu1 %v789_v2  ;;  %794 = vadd.xlane.f32.xlu0 %v787_v3 }
  0x8a   : > { %v802_v7 = vsub.f32 1.0, %v801_v6  ;;  %965 = vmatpush.bf16.msra.mxu1 %v3090_v31 }
  0x8b   : > { %1147 = vmatpush.bf16.msra.mxu2 %v3106_v32 }
  0x8c   : > { %v803_v8 = vmul.f32 %v3401_v5, %v802_v7 }
  0x8e   : > { %v804_v9 = vadd.f32 %v3401_v5, %v803_v8  ;;  %966 = vmatpush.bf16.msra.mxu1 %v3089_v33 }
  0x8f   : > { %1148 = vmatpush.bf16.msra.mxu2 %v3105_v34 }
  0x90   : > { %v4317_v10 = vsel %vm805_vm0, %v3401_v5, %v804_v9  ;;  %v3096_v9 = vld [vmem:[#allocation11 + $0x18] sm:$0xff]  ;;  %vm1476_vm0 = vcmask 785408  }
  0x92   : > { %967 = vmatpush.bf16.msra.mxu1 %v3088_v35 }
  0x93   : > { %1149 = vmatpush.bf16.msra.mxu2 %v3104_v36 }
  0x96   : > { %968 = vmatpush.bf16.msra.mxu1 %v3087_v37 }
  0x97   : > { %1150 = vmatpush.bf16.msra.mxu2 %v3103_v38 }
  0x9a   : > { %969 = vmatpush.bf16.msra.mxu1 %v3086_v39 }
  0x9b   : > { %1151 = vmatpush.bf16.msra.mxu2 %v3102_v40 }
  0x9e   : > { %970 = vmatpush.bf16.msra.mxu1 %v3085_v44 }
  0x9f   : > { %1152 = vmatpush.bf16.msra.mxu2 %v3101_v45 }
  0xa2   : > { %1054 = vmatpush.bf16.msrb.mxu1 %v3100_v48 }
  0xa6   : > { %1055 = vmatpush.bf16.msrb.mxu1 %v3099_v54 }
  0xaa   : > { %1056 = vmatpush.bf16.msrb.mxu1 %v3098_v59 }
  0xae   : > { %1057 = vmatpush.bf16.msrb.mxu1 %v3097_v62 }
  0xb2   : > { %1058 = vmatpush.bf16.msrb.mxu1 %v3096_v9  ;;  %v3395_v9 = vld [vmem:[%s4922_s19] ss:$0 sm:$0xff] }
  0xf4   : > { %v797_v11 = vpop.xlane.xlu1 %796  ;;  %v793_v12 = vpop.xlane.xlu0 %792 }
  0xf5   : > { %v809_v13 = vmul.f32 %v4317_v10, %v797_v11  ;;  %v807_v14 = vmul.f32 %v4317_v10, %v793_v12 }
  0xf7   : > { %v4321_v15 = vsub.f32 %v788_v0, %v809_v13  ;;  %v4323_v16 = vsub.f32 %v786_v1, %v807_v14  ;;  %v3095_v14 = vld [vmem:[#allocation11 + $0x10] sm:$0xff] }
  0xf8   : > { %1059 = vmatpush.bf16.msrb.mxu1 %v3095_v14 }
  0xf9   : > { %v817_v17 = vmul.f32 %v4321_v15, %v4321_v15  ;;  %v815_v18 = vmul.f32 %v4323_v16, %v4323_v16 }
  0xfb   : > { %823 = vadd.xlane.f32.xlu0 %v817_v17  ;;  %819 = vadd.xlane.f32.xlu2 %v815_v18 }
  0xfc   : > { %v799_v19 = vpop.xlane.xlu1 %798  ;;  %v795_v20 = vpop.xlane.xlu0 %794 }
  0xfd   : > { %v810_v21 = vmul.f32 %v4317_v10, %v799_v19  ;;  %v808_v22 = vmul.f32 %v4317_v10, %v795_v20  ;;  %v3391_v20 = vld [vmem:[#allocation8] ss:$0 sm:$0xff] }
  0xff   : > { %v4331_v23 = vsub.f32 %v789_v2, %v810_v21  ;;  %v4333_v24 = vsub.f32 %v787_v3, %v808_v22 }
 0x101   : > { %v818_v25 = vmul.f32 %v4331_v23, %v4331_v23  ;;  %v816_v26 = vmul.f32 %v4333_v24, %v4333_v24 }
 0x103   : > { %825 = vadd.xlane.f32.xlu1 %v818_v25  ;;  %821 = vadd.xlane.f32.xlu2 %v816_v26  ;;  %v3094_v25 = vld [vmem:[#allocation11 + $0x8] sm:$0xff] }
 0x104   : > { %1060 = vmatpush.bf16.msrb.mxu1 %v3094_v25 }
 0x16e   : > { %v820_v41 = vpop.xlane.xlu2 %819  ;;  %v824_v43 = vpop.xlane.xlu0 %823 }
 0x16f   : > { %v827_v42 = vmul.f32 %v820_v41, %v4317_v10  ;;  %v829_v47 = vmul.f32 %v824_v43, %v4317_v10 }
 0x171   : > { %v831_v46 = vadd.f32 1e-05, %v827_v42  ;;  %v4341_v49 = vadd.f32 1e-05, %v829_v47  ;;  %v3393_v47 = vld [vmem:[%s4921_s7] ss:$0 sm:$0xff] }
 0x173   : > { %3402 = vrsqrt.f32 %v831_v46  ;;  %vm841_vm2 = vweird.f32 %v831_v46  ;;  %vm861_vm9 = vweird.f32 %v4341_v49 }
 0x174   : > { %3404 = vrsqrt.f32 %v4341_v49 }
 0x176   : > { %v826_v50 = vpop.xlane.xlu1 %825  ;;  %v822_v51 = vpop.xlane.xlu2 %821 }
 0x177   : > { %v830_v52 = vmul.f32 %v826_v50, %v4317_v10  ;;  %v828_v53 = vmul.f32 %v822_v51, %v4317_v10 }
 0x179   : > { %v3403_v55 = vpop.eup %3402  ;;  %v834_v56 = vadd.f32 1e-05, %v830_v52  ;;  %v832_v57 = vadd.f32 1e-05, %v828_v53 }
 0x17a   : > { %v836_v58 = vmul.f32 %v3403_v55, %v831_v46  ;;  %v3405_v63 = vpop.eup %3404  ;;  %vm842_vm1 = vweird.f32 %v3403_v55 }
 0x17b   : > { %3406 = vrsqrt.f32 %v834_v56  ;;  %v856_v5 = vmul.f32 %v3405_v63, %v4341_v49  ;;  %vm843_vm3 = vmor %vm841_vm2, %vm842_vm1  ;;  %vm851_vm5 = vweird.f32 %v832_v57  ;;  %vm871_vm7 = vweird.f32 %v834_v56 }
 0x17c   : > { %v837_v60 = vmul.f32 %v3403_v55, %v836_v58  ;;  %3408 = vrsqrt.f32 %v832_v57  ;;  %vm862_vm10 = vweird.f32 %v3405_v63 }
 0x17d   : > { %v857_v12 = vmul.f32 %v3405_v63, %v856_v5  ;;  %vm863_vm12 = vmor %vm861_vm9, %vm862_vm10 }
 0x17e   : > { %v838_v61 = vmul.f32 0.5, %v837_v60  ;;  %v3394_v60 = vld [vmem:[#allocation14] ss:$0 sm:$0xff] }
 0x17f   : > { %v858_v21 = vmul.f32 0.5, %v857_v12 }
 0x180   : > { %v839_v0 = vsub.f32 1.5, %v838_v61 }
 0x181   : > { %v3407_v1 = vpop.eup %3406  ;;  %v859_v31 = vsub.f32 1.5, %v858_v21 }
 0x182   : > { %v3409_v2 = vpop.eup %3408  ;;  %v866_v3 = vmul.f32 %v3407_v1, %v834_v56  ;;  %v840_v4 = vmul.f32 %v3403_v55, %v839_v0  ;;  %vm872_vm8 = vweird.f32 %v3407_v1 }
 0x183   : > { %v846_v6 = vmul.f32 %v3409_v2, %v832_v57  ;;  %vm852_vm4 = vweird.f32 %v3409_v2  ;;  %vm873_vm11 = vmor %vm871_vm7, %vm872_vm8  ;;  %v860_v36 = vmul.f32 %v3405_v63, %v859_v31 }
 0x184   : > { %v867_v7 = vmul.f32 %v3407_v1, %v866_v3  ;;  %v844_v11 = vsel %vm843_vm3, %v3403_v55, %v840_v4  ;;  %vm853_vm6 = vmor %vm851_vm5, %vm852_vm4 }
 0x185   : > { %v847_v8 = vmul.f32 %v3409_v2, %v846_v6  ;;  %v875_v19 = vmul.f32 %v844_v11, %v4323_v16  ;;  %v3093_v16 = vld [vmem:[#allocation11] sm:$0xff]  ;;  %v864_v38 = vsel %vm863_vm12, %v3405_v63, %v860_v36 }
 0x186   : > { %v868_v17 = vmul.f32 0.5, %v867_v7  ;;  %1061 = vmatpush.bf16.msrb.mxu1 %v3093_v16  ;;  %v877_v40 = vmul.f32 %v864_v38, %v4321_v15 }
 0x187   : > { %v848_v13 = vmul.f32 0.5, %v847_v8  ;;  %v882_v29 = vmul.f32 %v3391_v20, %v875_v19 }
 0x188   : > { %v869_v26 = vsub.f32 1.5, %v868_v17  ;;  %v884_v42 = vmul.f32 %v3391_v20, %v877_v40 }
 0x189   : > { %v849_v18 = vsub.f32 1.5, %v848_v13  ;;  %v889_v34 = vadd.f32 %v3392_v30, %v882_v29 }
 0x18a   : > { %v870_v33 = vmul.f32 %v3407_v1, %v869_v26  ;;  %v891_v44 = vadd.f32 %v3392_v30, %v884_v42 }
 0x18b   : > { %v850_v22 = vmul.f32 %v3409_v2, %v849_v18 }
 0x18c   : > { %v874_v37 = vsel %vm873_vm11, %v3407_v1, %v870_v33 }
 0x18d   : > { %v854_v27 = vsel %vm853_vm6, %v3409_v2, %v850_v22  ;;  %v878_v39 = vmul.f32 %v874_v37, %v4331_v23 }
 0x18e   : > { %v876_v28 = vmul.f32 %v854_v27, %v4333_v24 }
 0x18f   : > { %v885_v41 = vmul.f32 %v3391_v20, %v878_v39 }
 0x190   : > { %v883_v32 = vmul.f32 %v3391_v20, %v876_v28 }
 0x191   : > { %v892_v43 = vadd.f32 %v3392_v30, %v885_v41 }
 0x192   : > { %v890_v35 = vadd.f32 %v3392_v30, %v883_v32 }
 0x193   : > { %v894_v45 = vpack.c.bf16 %v892_v43, %v891_v44 }
 0x194   : > { %v893_v24 = vpack.c.bf16 %v890_v35, %v889_v34 }
 0x196   : > { %971 = vmatmul.bf16.vlgmr.msra.gmra.mxu1 %v893_v24  ;;  %1153 = vmatmul.bf16.vlgmr.msra.gmra.mxu2 %v893_v24 }
 0x1a6   : > { %976 = vmatmul.bf16.gmra.mxu1 %v894_v45  ;;  %1158 = vmatmul.bf16.gmra.mxu2 %v894_v45 }
 0x1b6   : > { %1062 = vmatmul.bf16.vlgmr.msrb.gmra.mxu1 %v893_v24 }
 0x1c6   : > { %1067 = vmatmul.bf16.gmra.mxu1 %v894_v45 }
 0x213   : > { %v972_v46 = vpop.f32.mrf.mxu1 }
 0x214   : > { %v973_v48 = vadd.f32 %v3393_v47, %v972_v46 }
 0x216   : > { %v982_v23 = vpack.c.bf16 %v973_v48, %v973_v48 }
 0x218   : > { %v1170_v52 = vunpack.c.l.b16 %v982_v23 }
 0x219   : > { %v1154_v49 = vpop.f32.mrf.mxu2 }
 0x21a   : > { %v1155_v18 = vadd.f32 %v3394_v60, %v1154_v49 }
 0x21b   : > { %v974_v50 = vpop.f32.mrf.mxu1 }
 0x21c   : > { %v975_v51 = vadd.f32 %v3393_v47, %v974_v50  ;;  %v1164_v25 = vpack.c.bf16 %v1155_v18, %v1155_v18 }
 0x21e   : > { %v983_v15 = vpack.c.bf16 %v975_v51, %v975_v51  ;;  %v1225_v30 = vunpack.c.l.b16 %v1164_v25 }
 0x220   : > { %v1171_v53 = vunpack.c.l.b16 %v983_v15 }
 0x221   : > { %v1156_v54 = vpop.f32.mrf.mxu2 }
 0x222   : > { %v4358_v55 = vpack.c.b16 %v1171_v53, %v1170_v52  ;;  %v1157_v13 = vadd.f32 %v3394_v60, %v1156_v54 }
 0x223   : > { %v977_v56 = vpop.f32.mrf.mxu1 }
 0x224   : > { %v978_v57 = vadd.f32 %v3393_v47, %v977_v56  ;;  %1313 = vrot.lane.b32.xlu0 %v4358_v55, %s3940_s9  ;;  %v1165_v20 = vpack.c.bf16 %v1157_v13, %v1157_v13 }
 0x226   : > { %v984_v61 = vpack.c.bf16 %v978_v57, %v978_v57  ;;  %v1226_v27 = vunpack.c.l.b16 %v1165_v20 }
 0x228   : > { %v1485_v1 = vunpack.c.l.b16 %v984_v61  ;;  %v4370_v16 = vpack.c.b16 %v1226_v27, %v1225_v30 }
 0x229   : > { %v1159_v58 = vpop.f32.mrf.mxu2 }
 0x22a   : > { %v1160_v63 = vadd.f32 %v3394_v60, %v1159_v58 }
 0x22b   : > { %v979_v59 = vpop.f32.mrf.mxu1 }
 0x22c   : > { %v980_v62 = vadd.f32 %v3393_v47, %v979_v59  ;;  %v1166_v4 = vpack.c.bf16 %v1160_v63, %v1160_v63 }
 0x22e   : > { %v985_v0 = vpack.c.bf16 %v980_v62, %v980_v62  ;;  %v1538_v11 = vunpack.c.l.b16 %v1166_v4 }
 0x230   : > { %v1486_v2 = vunpack.c.l.b16 %v985_v0 }
 0x231   : > { %v1161_v3 = vpop.f32.mrf.mxu2 }
 0x232   : > { %v4362_v5 = vpack.c.b16 %v1486_v2, %v1485_v1  ;;  %v1162_v6 = vadd.f32 %v3394_v60, %v1161_v3 }
 0x233   : > { %v1063_v7 = vpop.f32.mrf.mxu1 }
 0x234   : > { %v1167_v8 = vpack.c.bf16 %v1162_v6, %v1162_v6  ;;  %v1064_v17 = vadd.f32 %v3395_v9, %v1063_v7 }
 0x236   : > { %v1539_v12 = vunpack.c.l.b16 %v1167_v8  ;;  %v1073_v21 = vpack.c.bf16 %v1064_v17, %v1064_v17 }
 0x238   : > { %v4367_v14 = vpack.c.b16 %v1539_v12, %v1538_v11  ;;  %v1175_v28 = vunpack.c.l.b16 %v1073_v21 }
 0x23a   : > { %1552 = vmatpush.bf16.msra.mxu1 %v4367_v14 }
 0x23b   : > { %v1065_v19 = vpop.f32.mrf.mxu1 }
 0x23c   : > { %v1066_v22 = vadd.f32 %v3395_v9, %v1065_v19 }
 0x23e   : > { %v1074_v26 = vpack.c.bf16 %v1066_v22, %v1066_v22 }
 0x240   : > { %v1176_v29 = vunpack.c.l.b16 %v1074_v26 }
 0x242   : > { %v1177_v31 = vpack.c.b16 %v1176_v29, %v1175_v28 }
 0x243   : > { %v1068_v43 = vpop.f32.mrf.mxu1 }
 0x244   : > { %1315 = vrot.lane.b32.xlu2 %v1177_v31, %s3940_s9  ;;  %v1183_v32 = vsel %vm1178_vm13, %v1177_v31, 0  ;;  %v1069_v49 = vadd.f32 %v3395_v9, %v1068_v43 }
 0x245   : > { %1192 = vmatpush.bf16.xpose.msra.mxu3 %v1183_v32 }
 0x246   : > { %v1075_v23 = vpack.c.bf16 %v1069_v49, %v1069_v49 }
 0x248   : > { %v1490_v53 = vunpack.c.l.b16 %v1075_v23 }
 0x24b   : > { %v1070_v45 = vpop.f32.mrf.mxu1 }
 0x24c   : > { %2874 = vmatmul.msk.bf16.vlgmr.msra.gmra.mxu3 %vm1178_vm13, %v4358_v55  ;;  %v1071_v48 = vadd.f32 %v3395_v9, %v1070_v45 }
 0x24d   : > { %1239 = vmatpush.bf16.msrb.mxu3 %v4370_v16 }
 0x24e   : > { %v1076_v50 = vpack.c.bf16 %v1071_v48, %v1071_v48 }
 0x250   : > { %v1491_v15 = vunpack.c.l.b16 %v1076_v50 }
 0x252   : > { %v1492_v54 = vpack.c.b16 %v1491_v15, %v1490_v53 }
 0x254   : > { %v1497_v17 = vsel %vm1178_vm13, %v1492_v54, 0 }
 0x296   : > { %v1314_v35 = vpop.permute.xlu0 %1313 }
 0x29e   : > { %v1316_v33 = vpop.permute.xlu2 %1315 }
 0x29f   : > { %v1321_v34 = vsel %vm1178_vm13, %v1316_v33, 0 }
 0x2a0   : > { %1330 = vmatpush.bf16.xpose.msra.mxu0 %v1321_v34 }
 0x2a7   : > { %2878 = vmatmul.msk.bf16.vlgmr.msra.gmra.mxu0 %vm1178_vm13, %v1314_v35 }
 0x2cf   : > { %v1194_v36 = vpop.f32.mrf.mxu3 }
 0x2d0   : > { %v1200_v24 = vsel %vm1199_vm14, %v1194_v36, -inf }
 0x2d1   : > { %1201 = vmax.xlane.f32.xlu1 %v1200_v24 }
 0x2d7   : > { %v1196_v37 = vpop.f32.mrf.mxu3 }
 0x2d8   : > { %v1203_v38 = vsel %vm1199_vm14, %v1196_v37, -inf }
 0x2d9   : > { %1204 = vmax.xlane.f32.xlu1 %v1203_v38 }
 0x324   : > { %v1332_v39 = vpop.f32.mrf.mxu0 }
 0x325   : > { %v1337_v40 = vsel %vm1199_vm14, %v1332_v39, -inf }
 0x326   : > { %1338 = vmax.xlane.f32.xlu1 %v1337_v40 }
 0x32c   : > { %v1334_v41 = vpop.f32.mrf.mxu0 }
 0x32d   : > { %v1340_v42 = vsel %vm1199_vm14, %v1334_v41, -inf }
 0x32e   : > { %1341 = vmax.xlane.f32.xlu2 %v1340_v42 }
 0x33f   : > { %1248 = vrot.lane.b32.xlu1 %v1177_v31, %s3941_s3 }
 0x344   : > { %v1202_v44 = vpop.xlane.xlu1 %1201 }
 0x345   : > { %v1206_v46 = vsub.f32 %v1194_v36, %v1202_v44 }
 0x346   : > { %1382 = vrot.lane.b32.xlu2 %v1177_v31, %s3942_s30 }
 0x347   : > { %v1208_v47 = vmul.f32 1.442695, %v1206_v46 }
 0x349   : > { %3410 = vpow2.f32 %v1208_v47 }
 0x34c   : > { %v1205_v56 = vpop.xlane.xlu1 %1204 }
 0x34d   : > { %v1207_v57 = vsub.f32 %v1196_v37, %v1205_v56 }
 0x34e   : > { %1360 = vrot.lane.b32.xlu2 %v4370_v16, %s3940_s9 }
 0x34f   : > { %v3411_v51 = vpop.eup %3410  ;;  %v1210_v58 = vmul.f32 1.442695, %v1207_v57 }
 0x350   : > { %v1212_v52 = vsel %vm1199_vm14, %v3411_v51, 0.0 }
 0x351   : > { %1213 = vadd.xlane.f32.xlu0 %v1212_v52  ;;  %3412 = vpow2.f32 %v1210_v58 }
 0x356   : > { %1561 = vrot.lane.b32.xlu2 %v1492_v54, %s3941_s3 }
 0x357   : > { %v3413_v59 = vpop.eup %3412 }
 0x358   : > { %v1215_v60 = vsel %vm1199_vm14, %v3413_v59, 0.0 }
 0x35e   : > { %1695 = vrot.lane.b32.xlu2 %v1492_v54, %s3942_s30 }
 0x366   : > { %1628 = vrot.lane.b32.xlu2 %v1492_v54, %s3940_s9 }
 0x369   : > { %1216 = vadd.xlane.f32.xlu1 %v1215_v60 }
 0x382   : > { %1246 = vrot.lane.b32.xlu1 %v4358_v55, %s3941_s3 }
 0x399   : > { %v1339_v61 = vpop.xlane.xlu1 %1338 }
 0x39a   : > { %v1343_v62 = vsub.f32 %v1332_v39, %v1339_v61 }
 0x39c   : > { %v1345_v63 = vmul.f32 1.442695, %v1343_v62 }
 0x39e   : > { %3414 = vpow2.f32 %v1345_v63 }
 0x3a1   : > { %v1342_v0 = vpop.xlane.xlu2 %1341 }
 0x3a2   : > { %v1344_v1 = vsub.f32 %v1334_v41, %v1342_v0 }
 0x3a4   : > { %v3415_v2 = vpop.eup %3414  ;;  %v1347_v3 = vmul.f32 1.442695, %v1344_v1 }
 0x3a5   : > { %v1349_v4 = vsel %vm1199_vm14, %v3415_v2, 0.0 }
 0x3a6   : > { %3416 = vpow2.f32 %v1347_v3  ;;  %1350 = vadd.xlane.f32.xlu0 %v1349_v4 }
 0x3a9   : > { %v1383_v6 = vpop.permute.xlu2 %1382 }
 0x3aa   : > { %v1388_v7 = vsel %vm1178_vm13, %v1383_v6, 0 }
 0x3ab   : > { %1397 = vmatpush.bf16.xpose.msrb.mxu2 %v1388_v7 }
 0x3ac   : > { %v3417_v8 = vpop.eup %3416 }
 0x3ad   : > { %v1352_v9 = vsel %vm1199_vm14, %v3417_v8, 0.0 }
 0x3ae   : > { %1353 = vadd.xlane.f32.xlu1 %v1352_v9 }
 0x3b1   : > { %v1249_v11 = vpop.permute.xlu1 %1248  ;;  %v1361_v12 = vpop.permute.xlu2 %1360 }
 0x3b2   : > { %v1254_v13 = vsel %vm1178_vm13, %v1249_v11, 0  ;;  %1373 = vmatpush.bf16.msrb.mxu0 %v1361_v12 }
 0x3b3   : > { %1263 = vmatpush.bf16.xpose.msra.mxu3 %v1254_v13 }
 0x3b6   : > { %1506 = vmatpush.bf16.xpose.msra.mxu0 %v1497_v17 }
 0x3b9   : > { %v1562_v18 = vpop.permute.xlu2 %1561 }
 0x3ba   : > { %v1567_v19 = vsel %vm1178_vm13, %v1562_v18, 0  ;;  %1380 = vrot.lane.b32.xlu0 %v4358_v55, %s3942_s30 }
 0x3bb   : > { %1576 = vmatpush.bf16.xpose.msra.mxu2 %v1567_v19 }
 0x3c1   : > { %v1696_v30 = vpop.permute.xlu2 %1695 }
 0x3c2   : > { %1559 = vrot.lane.b32.xlu0 %v4362_v5, %s3941_s3  ;;  %v1701_v38 = vsel %vm1178_vm13, %v1696_v30, 0 }
 0x3c4   : > { %v1214_v20 = vpop.xlane.xlu0 %1213 }
 0x3c5   : > { %3418 = vrcp.f32 %v1214_v20 }
 0x3c9   : > { %v1629_v36 = vpop.permute.xlu2 %1628 }
 0x3ca   : > { %1693 = vrot.lane.b32.xlu0 %v4362_v5, %s3942_s30  ;;  %v1634_v39 = vsel %vm1178_vm13, %v1629_v36, 0 }
 0x3cb   : > { %v3419_v22 = vpop.eup %3418 }
 0x3cc   : > { %v1220_v26 = vmul.f32 %v3419_v22, %v3411_v51 }
 0x3d2   : > { %1626 = vrot.lane.b32.xlu0 %v4362_v5, %s3940_s9 }
 0x3dc   : > { %v1217_v21 = vpop.xlane.xlu1 %1216 }
 0x3dd   : > { %3420 = vrcp.f32 %v1217_v21 }
 0x3e3   : > { %v3421_v25 = vpop.eup %3420 }
 0x3e4   : > { %v1221_v27 = vmul.f32 %v3421_v25, %v3413_v59 }
 0x3e6   : > { %v1222_v28 = vpack.c.bf16 %v1221_v27, %v1220_v26 }
 0x3e8   : > { %2875 = vmatmul.msk.bf16.vlgmr.msrb.gmra.mxu3 %vm1199_vm14, %v1222_v28 }
 0x3f4   : > { %v1247_v55 = vpop.permute.xlu1 %1246 }
 0x3f8   : > { %2876 = vmatmul.msk.bf16.vlgmr.msra.gmra.mxu3 %vm1178_vm13, %v1247_v55 }
 0x419   : > { %v1351_v29 = vpop.xlane.xlu0 %1350 }
 0x41a   : > { %3422 = vrcp.f32 %v1351_v29 }
 0x420   : > { %v3423_v32 = vpop.eup %3422 }
 0x421   : > { %v1354_v31 = vpop.xlane.xlu1 %1353  ;;  %v1357_v34 = vmul.f32 %v3423_v32, %v3415_v2 }
 0x422   : > { %3424 = vrcp.f32 %v1354_v31 }
 0x428   : > { %v3425_v33 = vpop.eup %3424 }
 0x429   : > { %v1358_v35 = vmul.f32 %v3425_v33, %v3417_v8 }
 0x42b   : > { %v1359_v24 = vpack.c.bf16 %v1358_v35, %v1357_v34 }
 0x42c   : > { %v1381_v37 = vpop.permute.xlu0 %1380 }
 0x42d   : > { %2879 = vmatmul.msk.bf16.vlgmr.msrb.gmra.mxu0 %vm1199_vm14, %v1359_v24  ;;  %2880 = vmatmul.msk.bf16.vlgmr.msrb.gmra.mxu2 %vm1178_vm13, %v1381_v37 }
 0x42e   : > { %1643 = vmatpush.bf16.xpose.msrb.mxu0 %v1634_v39  ;;  %1710 = vmatpush.bf16.xpose.msrb.mxu2 %v1701_v38 }
 0x434   : > { %v1560_v40 = vpop.permute.xlu0 %1559 }
 0x43c   : > { %v1694_v41 = vpop.permute.xlu0 %1693 }
 0x43d   : > { %2882 = vmatmul.msk.bf16.vlgmr.msra.gmra.mxu0 %vm1178_vm13, %v4362_v5  ;;  %2884 = vmatmul.msk.bf16.vlgmr.msra.gmra.mxu2 %vm1178_vm13, %v1560_v40 }
 0x444   : > { %v1627_v42 = vpop.permute.xlu0 %1626 }
 0x44d   : > { %2886 = vmatmul.msk.bf16.vlgmr.msrb.gmra.mxu0 %vm1178_vm13, %v1627_v42  ;;  %2888 = vmatmul.msk.bf16.vlgmr.msrb.gmra.mxu2 %vm1178_vm13, %v1694_v41 }
 0x46b   : > { %v4426_v5 = vpop.f32.mrf.mxu3 }
 0x473   : > { %v4430_v51 = vpop.f32.mrf.mxu3 }
 0x47b   : > { %v4433_v53 = vpop.f32.mrf.mxu3 }
 0x47c   : > { %v1270_v61 = vsel %vm1199_vm14, %v4433_v53, -inf }
 0x483   : > { %v1267_v57 = vpop.f32.mrf.mxu3 }
 0x484   : > { %v1273_v59 = vsel %vm1199_vm14, %v1267_v57, -inf }
 0x4aa   : > { %v4419_v43 = vpop.f32.mrf.mxu0 }
 0x4b0   : > { %v1399_v44 = vpop.f32.mrf.mxu2 }
 0x4b1   : > { %v1404_v45 = vsel %vm1199_vm14, %v1399_v44, -inf }
 0x4b2   : > { %v4422_v46 = vpop.f32.mrf.mxu0  ;;  %1405 = vmax.xlane.f32.xlu0 %v1404_v45 }
 0x4b3   : > { %v3366_v47 = vpack.i.bf16 %v4422_v46, %v4419_v43 }
 0x4b8   : > { %v1401_v48 = vpop.f32.mrf.mxu2 }
 0x4b9   : > { %v1407_v49 = vsel %vm1199_vm14, %v1401_v48, -inf }
 0x4ba   : > { %1408 = vmax.xlane.f32.xlu1 %v1407_v49  ;;  %v4450_v4 = vpop.f32.mrf.mxu0 }
 0x4bb   : > { %v1513_v17 = vsel %vm1199_vm14, %v4450_v4, -inf }
 0x4c0   : > { %v1578_v50 = vpop.f32.mrf.mxu2 }
 0x4c1   : > { %v1583_v23 = vsel %vm1199_vm14, %v1578_v50, -inf }
 0x4c2   : > { %1584 = vmax.xlane.f32.xlu1 %v1583_v23  ;;  %v1510_v18 = vpop.f32.mrf.mxu0 }
 0x4c3   : > { %v1516_v26 = vsel %vm1199_vm14, %v1510_v18, -inf }
 0x4c8   : > { %v1580_v15 = vpop.f32.mrf.mxu2 }
 0x4c9   : > { %v1586_v52 = vsel %vm1199_vm14, %v1580_v15, -inf }
 0x4ca   : > { %1587 = vmax.xlane.f32.xlu1 %v1586_v52  ;;  %v1645_v27 = vpop.f32.mrf.mxu0 }
 0x4cb   : > { %v1650_v30 = vsel %vm1199_vm14, %v1645_v27, -inf }
 0x4d0   : > { %v4435_v54 = vpop.f32.mrf.mxu2 }
 0x4d1   : > { %v1717_v56 = vsel %vm1199_vm14, %v4435_v54, -inf }
 0x4d2   : > { %1718 = vmax.xlane.f32.xlu2 %v1717_v56  ;;  %v1647_v33 = vpop.f32.mrf.mxu0 }
 0x4d3   : > { %v1653_v36 = vsel %vm1199_vm14, %v1647_v33, -inf }
 0x4d8   : > { %v4439_v58 = vpop.f32.mrf.mxu2 }
 0x4d9   : > { %v1720_v60 = vsel %vm1199_vm14, %v4439_v58, -inf }
 0x4da   : > { %1274 = vmax.xlane.f32.xlu2 %v1273_v59  ;;  %1721 = vmax.xlane.f32.xlu1 %v1720_v60 }
 0x4e2   : > { %1271 = vmax.xlane.f32.xlu1 %v1270_v61 }
 0x4f2   : > { %1293 = vrot.lane.b32.xlu2 %v4370_v16, %s3941_s3 }
 0x525   : > { %v1406_v62 = vpop.xlane.xlu0 %1405 }
 0x526   : > { %v1410_v63 = vsub.f32 %v1399_v44, %v1406_v62 }
 0x528   : > { %v1412_v0 = vmul.f32 1.442695, %v1410_v63 }
 0x52a   : > { %3426 = vpow2.f32 %v1412_v0 }
 0x52d   : > { %v1409_v1 = vpop.xlane.xlu1 %1408 }
 0x52e   : > { %v1411_v2 = vsub.f32 %v1401_v48, %v1409_v1 }
 0x530   : > { %v4448_v3 = vpop.eup %3426  ;;  %v1414_v6 = vmul.f32 1.442695, %v1411_v2 }
 0x531   : > { %v1416_v7 = vsel %vm1199_vm14, %v4448_v3, 0.0 }
 0x532   : > { %3428 = vpow2.f32 %v1414_v6  ;;  %1417 = vadd.xlane.f32.xlu1 %v1416_v7 }
 0x535   : > { %v1585_v8 = vpop.xlane.xlu1 %1584 }
 0x536   : > { %v1589_v9 = vsub.f32 %v1578_v50, %v1585_v8 }
 0x538   : > { %v4454_v11 = vpop.eup %3428  ;;  %v1591_v12 = vmul.f32 1.442695, %v1589_v9 }
 0x539   : > { %v1419_v13 = vsel %vm1199_vm14, %v4454_v11, 0.0 }
 0x53a   : > { %3430 = vpow2.f32 %v1591_v12  ;;  %1420 = vadd.xlane.f32.xlu0 %v1419_v13  ;;  %1514 = vmax.xlane.f32.xlu1 %v1513_v17 }
 0x53d   : > { %v1588_v19 = vpop.xlane.xlu1 %1587 }
 0x53e   : > { %v1590_v20 = vsub.f32 %v1580_v15, %v1588_v19 }
 0x540   : > { %v4460_v21 = vpop.eup %3430  ;;  %v1593_v22 = vmul.f32 1.442695, %v1590_v20 }
 0x541   : > { %v1595_v25 = vsel %vm1199_vm14, %v4460_v21, 0.0 }
 0x542   : > { %3432 = vpow2.f32 %v1593_v22  ;;  %1596 = vadd.xlane.f32.xlu0 %v1595_v25  ;;  %1517 = vmax.xlane.f32.xlu1 %v1516_v26 }
 0x545   : > { %v1719_v28 = vpop.xlane.xlu2 %1718 }
 0x546   : > { %v1723_v45 = vsub.f32 %v4435_v54, %v1719_v28 }
 0x548   : > { %v3433_v55 = vpop.eup %3432  ;;  %v1725_v48 = vmul.f32 1.442695, %v1723_v45 }
 0x549   : > { %v1598_v29 = vsel %vm1199_vm14, %v3433_v55, 0.0 }
 0x54a   : > { %1599 = vadd.xlane.f32.xlu0 %v1598_v29  ;;  %1651 = vmax.xlane.f32.xlu1 %v1650_v30 }
 0x54d   : > { %v1275_v31 = vpop.xlane.xlu2 %1274  ;;  %v4467_v32 = vpop.xlane.xlu1 %1721 }
 0x54e   : > { %v1277_v34 = vsub.f32 %v1267_v57, %v1275_v31 }
 0x550   : > { %v1280_v35 = vmul.f32 1.442695, %v1277_v34  ;;  %v1724_v34 = vsub.f32 %v4439_v58, %v4467_v32 }
 0x552   : > { %3434 = vpow2.f32 %v1280_v35  ;;  %1654 = vmax.xlane.f32.xlu0 %v1653_v36  ;;  %v1727_v36 = vmul.f32 1.442695, %v1724_v34 }
 0x555   : > { %v1294_v24 = vpop.permute.xlu2 %1293  ;;  %v1272_v37 = vpop.xlane.xlu1 %1271 }
 0x556   : > { %v1276_v38 = vsub.f32 %v4433_v53, %v1272_v37  ;;  %1306 = vmatpush.bf16.msrb.mxu3 %v1294_v24 }
 0x558   : > { %v4471_v39 = vpop.eup %3434  ;;  %v1278_v40 = vmul.f32 1.442695, %v1276_v38 }
 0x559   : > { %v1285_v41 = vsel %vm1199_vm14, %v4471_v39, 0.0 }
 0x55a   : > { %3436 = vpow2.f32 %v1278_v40  ;;  %1286 = vadd.xlane.f32.xlu2 %v1285_v41 }
 0x55b   : > { %3438 = vpow2.f32 %v1725_v48 }
 0x560   : > { %v3437_v42 = vpop.eup %3436 }
 0x561   : > { %v1282_v44 = vsel %vm1199_vm14, %v3437_v42, 0.0  ;;  %v4479_v49 = vpop.eup %3438 }
 0x562   : > { %1283 = vadd.xlane.f32.xlu0 %v1282_v44  ;;  %v1729_v50 = vsel %vm1199_vm14, %v4479_v49, 0.0 }
 0x563   : > { %1427 = vrot.lane.b32.xlu1 %v4370_v16, %s3942_s30 }
 0x58d   : > { %1730 = vadd.xlane.f32.xlu1 %v1729_v50 }
 0x5a5   : > { %v1418_v23 = vpop.xlane.xlu1 %1417 }
 0x5a6   : > { %1740 = vrot.lane.b32.xlu1 %v4367_v14, %s3942_s30 }
 0x5ad   : > { %v1515_v15 = vpop.xlane.xlu1 %1514  ;;  %v1421_v52 = vpop.xlane.xlu0 %1420 }
 0x5ae   : > { %v1519_v53 = vsub.f32 %v4450_v4, %v1515_v15  ;;  %3367 = vrot.lane.b32.xlu1 %v3366_v47, %s3940_s9 }
 0x5b0   : > { %v1521_v16 = vmul.f32 1.442695, %v1519_v53 }
 0x5b2   : > { %3440 = vpow2.f32 %v1521_v16 }
 0x5b5   : > { %v1518_v54 = vpop.xlane.xlu1 %1517  ;;  %v1597_v56 = vpop.xlane.xlu0 %1596 }
 0x5b6   : > { %v1520_v57 = vsub.f32 %v1510_v18, %v1518_v54 }
 0x5b8   : > { %v4490_v59 = vpop.eup %3440  ;;  %v1523_v60 = vmul.f32 1.442695, %v1520_v57 }
 0x5b9   : > { %v1525_v61 = vsel %vm1199_vm14, %v4490_v59, 0.0 }
 0x5ba   : > { %3442 = vpow2.f32 %v1523_v60  ;;  %1526 = vadd.xlane.f32.xlu2 %v1525_v61 }
 0x5bb   : > { %3444 = vrcp.f32 %v1597_v56 }
 0x5bd   : > { %v1652_v62 = vpop.xlane.xlu1 %1651  ;;  %v1600_v63 = vpop.xlane.xlu0 %1599 }
 0x5be   : > { %v1656_v0 = vsub.f32 %v1645_v27, %v1652_v62  ;;  %3446 = vrcp.f32 %v1600_v63 }
 0x5c0   : > { %v3443_v43 = vpop.eup %3442  ;;  %v1658_v46 = vmul.f32 1.442695, %v1656_v0 }
 0x5c1   : > { %v1528_v47 = vsel %vm1199_vm14, %v3443_v43, 0.0  ;;  %v3445_v1 = vpop.eup %3444 }
 0x5c2   : > { %3448 = vpow2.f32 %v1658_v46  ;;  %1529 = vadd.xlane.f32.xlu0 %v1528_v47  ;;  %v4496_v4 = vmul.f32 %v3445_v1, %v4460_v21  ;;  %v3118_v47 = vld [vmem:[#allocation16 + $0x38] sm:$0xff]  ;;  %v3117_v1 = vld [vmem:[#allocation16 + $0x30] sm:$0xff] }
 0x5c3   : > { %1878 = vmatpush.bf16.msra.mxu0 %v3118_v47 }
 0x5c4   : > { %v3447_v2 = vpop.eup %3446 }
 0x5c5   : > { %v1604_v6 = vmul.f32 %v3447_v2, %v3433_v55  ;;  %v1655_v7 = vpop.xlane.xlu0 %1654  ;;  %v3116_v2 = vld [vmem:[#allocation16 + $0x28] sm:$0xff] }
 0x5c6   : > { %v1657_v8 = vsub.f32 %v1647_v33, %v1655_v7  ;;  %v3114_v7 = vld [vmem:[#allocation16 + $0x18] sm:$0xff] }
 0x5c7   : > { %v1605_v9 = vpack.c.bf16 %v1604_v6, %v4496_v4  ;;  %1879 = vmatpush.bf16.msra.mxu0 %v3117_v1  ;;  %v3115_v4 = vld [vmem:[#allocation16 + $0x20] sm:$0xff] }
 0x5c8   : > { %v3449_v12 = vpop.eup %3448  ;;  %v1660_v13 = vmul.f32 1.442695, %v1657_v8  ;;  %v3113_v8 = vld [vmem:[#allocation16 + $0x10] sm:$0xff] }
 0x5c9   : > { %v1662_v17 = vsel %vm1199_vm14, %v3449_v12, 0.0 }
 0x5ca   : > { %3450 = vpow2.f32 %v1660_v13  ;;  %1663 = vadd.xlane.f32.xlu2 %v1662_v17 }
 0x5cb   : > { %1880 = vmatpush.bf16.msra.mxu0 %v3116_v2 }
 0x5cd   : > { %v1287_v19 = vpop.xlane.xlu2 %1286 }
 0x5ce   : > { %3452 = vrcp.f32 %v1287_v19 }
 0x5cf   : > { %1881 = vmatpush.bf16.msra.mxu0 %v3115_v4 }
 0x5d0   : > { %v3451_v18 = vpop.eup %3450 }
 0x5d1   : > { %v1665_v20 = vsel %vm1199_vm14, %v3451_v18, 0.0 }
 0x5d2   : > { %1666 = vadd.xlane.f32.xlu2 %v1665_v20 }
 0x5d3   : > { %1882 = vmatpush.bf16.msra.mxu0 %v3114_v7 }
 0x5d4   : > { %v3453_v25 = vpop.eup %3452 }
 0x5d5   : > { %v1428_v22 = vpop.permute.xlu1 %1427  ;;  %v1284_v21 = vpop.xlane.xlu0 %1283  ;;  %v1291_v27 = vmul.f32 %v3453_v25, %v4471_v39 }
 0x5d6   : > { %3454 = vrcp.f32 %v1284_v21  ;;  %1606 = vrot.lane.b32.xlu0 %v4367_v14, %s3941_s3  ;;  %1440 = vmatpush.bf16.msra.mxu3 %v1428_v22 }
 0x5d7   : > { %3456 = vrcp.f32 %v1421_v52  ;;  %1883 = vmatpush.bf16.msra.mxu0 %v3113_v8 }
 0x5d8   : > { %3458 = vrcp.f32 %v1418_v23 }
 0x5d9   : > { %3460 = vpow2.f32 %v1727_v36 }
 0x5dc   : > { %v3455_v26 = vpop.eup %3454 }
 0x5dd   : > { %v1290_v28 = vmul.f32 %v3455_v26, %v3437_v42  ;;  %v3457_v29 = vpop.eup %3456 }
 0x5de   : > { %v3459_v30 = vpop.eup %3458  ;;  %v1425_v31 = vmul.f32 %v3457_v29, %v4454_v11 }
 0x5df   : > { %v1292_v55 = vpack.c.bf16 %v1291_v27, %v1290_v28  ;;  %v1424_v33 = vmul.f32 %v3459_v30, %v4448_v3  ;;  %v3461_v24 = vpop.eup %3460 }
 0x5e0   : > { %v1732_v37 = vsel %vm1199_vm14, %v3461_v24, 0.0 }
 0x5e1   : > { %2877 = vmatmul.msk.bf16.vlgmr.msrb.gmra.mxu3 %vm1199_vm14, %v1292_v55  ;;  %v1426_v35 = vpack.c.bf16 %v1425_v31, %v1424_v33 }
 0x5ea   : > { %1673 = vrot.lane.b32.xlu2 %v4367_v14, %s3940_s9 }
 0x5f1   : > { %2881 = vmatmul.msk.bf16.vlgmr.msra.gmra.mxu3 %vm1199_vm14, %v1426_v35 }
 0x600   : > { %1733 = vadd.xlane.f32.xlu0 %v1732_v37  ;;  %v1731_v32 = vpop.xlane.xlu1 %1730 }
 0x618   : > { %v1741_v45 = vpop.permute.xlu1 %1740 }
 0x620   : > { %v3368_v21 = vpop.permute.xlu1 %3367 }
 0x621   : > { %v3370_v55 = vunpack.i.h.bf16 %v3368_v21  ;;  %v3369_v29 = vunpack.i.l.bf16 %v3368_v21  ;;  %v3485_v21 = vld [vmem:[%s4275_s10 + $0x18] sm:$0xff] }
 0x62d   : > { %v1527_v38 = vpop.xlane.xlu2 %1526 }
 0x62e   : > { %3462 = vrcp.f32 %v1527_v38 }
 0x634   : > { %v3463_v14 = vpop.eup %3462 }
 0x635   : > { %v1530_v39 = vpop.xlane.xlu0 %1529  ;;  %v1533_v3 = vmul.f32 %v3463_v14, %v4490_v59 }
 0x636   : > { %3464 = vrcp.f32 %v1530_v39 }
 0x63c   : > { %v3465_v11 = vpop.eup %3464 }
 0x63d   : > { %v1534_v40 = vmul.f32 %v3465_v11, %v3443_v43  ;;  %v1664_v41 = vpop.xlane.xlu2 %1663 }
 0x63e   : > { %3466 = vrcp.f32 %v1664_v41  ;;  %v3397_v41 = vld [vmem:[%s4924_s16] ss:$0 sm:$0xff] }
 0x63f   : > { %v1535_v58 = vpack.c.bf16 %v1534_v40, %v1533_v3 }
 0x641   : > { %2883 = vmatmul.msk.bf16.vlgmr.msra.gmra.mxu1 %vm1199_vm14, %v1535_v58  ;;  %v3482_v58 = vld [vmem:[%s4275_s10] sm:$0xff] }
 0x644   : > { %v3467_v48 = vpop.eup %3466 }
 0x645   : > { %v1667_v42 = vpop.xlane.xlu2 %1666  ;;  %v1670_v23 = vmul.f32 %v3467_v48, %v3449_v12  ;;  %v3111_v12 = vld [vmem:[#allocation16] sm:$0xff] }
 0x646   : > { %3468 = vrcp.f32 %v1667_v42 }
 0x647   : > { %3470 = vrcp.f32 %v1731_v32 }
 0x648   : > { %v1607_v44 = vpop.permute.xlu0 %1606 }
 0x649   : > { %1619 = vmatpush.bf16.msrb.mxu3 %v1607_v44 }
 0x64c   : > { %v3469_v50 = vpop.eup %3468  ;;  %2885 = vmatmul.msk.bf16.vlgmr.msrb.gmra.mxu3 %vm1199_vm14, %v1605_v9  ;;  %v3112_v9 = vld [vmem:[#allocation16 + $0x8] sm:$0xff] }
 0x64d   : > { %1753 = vmatpush.bf16.msra.mxu3 %v1741_v45  ;;  %v1671_v15 = vmul.f32 %v3469_v50, %v3451_v18  ;;  %v1674_v52 = vpop.permute.xlu2 %1673  ;;  %v3471_v60 = vpop.eup %3470  ;;  %1884 = vmatpush.bf16.msra.mxu0 %v3112_v9 }
 0x64e   : > { %1686 = vmatpush.bf16.msrb.mxu1 %v1674_v52  ;;  %v1737_v62 = vmul.f32 %v3471_v60, %v4479_v49 }
 0x64f   : > { %v1672_v53 = vpack.c.bf16 %v1671_v15, %v1670_v23  ;;  %v3483_v15 = vld [vmem:[%s4275_s10 + $0x8] sm:$0xff] }
 0x651   : > { %2887 = vmatmul.msk.bf16.vlgmr.msrb.gmra.mxu1 %vm1199_vm14, %v1672_v53  ;;  %1885 = vmatpush.bf16.msra.mxu0 %v3111_v12 }
 0x664   : > { %v1308_v16 = vpop.f32.mrf.mxu3 }
 0x66c   : > { %v1310_v54 = vpop.f32.mrf.mxu3 }
 0x66d   : > { %v3361_v56 = vpack.i.bf16 %v1310_v54, %v1308_v16 }
 0x66f   : > { %3362 = vrot.lane.b32.xlu0 %v3361_v56, %s3942_s30 }
 0x673   : > { %v1734_v57 = vpop.xlane.xlu0 %1733 }
 0x674   : > { %3472 = vrcp.f32 %v1734_v57  ;;  %v1442_v59 = vpop.f32.mrf.mxu3 }
 0x67a   : > { %v3473_v61 = vpop.eup %3472 }
 0x67b   : > { %v1738_v63 = vmul.f32 %v3473_v61, %v3461_v24 }
 0x67c   : > { %v1444_v0 = vpop.f32.mrf.mxu3 }
 0x67d   : > { %v1739_v43 = vpack.c.bf16 %v1738_v63, %v1737_v62  ;;  %v3371_v46 = vpack.i.bf16 %v1444_v0, %v1442_v59 }
 0x67f   : > { %3372 = vrot.lane.b32.xlu2 %v3371_v46, %s3941_s3  ;;  %2889 = vmatmul.msk.bf16.vlgmr.msra.gmra.mxu3 %vm1199_vm14, %v1739_v43 }
 0x6be   : > { %v4521_v6 = vpop.f32.mrf.mxu1 }
 0x6c6   : > { %v1556_v49 = vpop.f32.mrf.mxu1 }
 0x6ce   : > { %v1688_v13 = vpop.f32.mrf.mxu1 }
 0x6cf   : > { %v1621_v17 = vpop.f32.mrf.mxu3 }
 0x6d6   : > { %v1690_v18 = vpop.f32.mrf.mxu1 }
 0x6d7   : > { %v3381_v19 = vpack.i.bf16 %v1690_v18, %v1688_v13  ;;  %v1623_v20 = vpop.f32.mrf.mxu3  ;;  %v3484_v13 = vld [vmem:[%s4275_s10 + $0x10] sm:$0xff] }
 0x6d8   : > { %v3376_v22 = vpack.i.bf16 %v1623_v20, %v1621_v17 }
 0x6d9   : > { %3382 = vrot.lane.b32.xlu2 %v3381_v19, %s3940_s9  ;;  %v3373_v25 = vpop.permute.xlu2 %3372 }
 0x6da   : > { %3377 = vrot.lane.b32.xlu1 %v3376_v22, %s3942_s30  ;;  %v3375_v30 = vunpack.i.h.bf16 %v3373_v25  ;;  %v3374_v31 = vunpack.i.l.bf16 %v3373_v25 }
 0x6e1   : > { %v3363_v26 = vpop.permute.xlu0 %3362 }
 0x6e2   : > { %v3365_v27 = vunpack.i.h.bf16 %v3363_v26  ;;  %v3364_v28 = vunpack.i.l.bf16 %v3363_v26 }
 0x6e4   : > { %v1472_v33 = vsel %vm1178_vm13, %v4430_v51, %v3365_v27  ;;  %v1471_v34 = vsel %vm1178_vm13, %v4426_v5, %v3364_v28  ;;  %v3396_v5 = vld [vmem:[%s4923_s8] ss:$0 sm:$0xff] }
 0x6e5   : > { %v1475_v35 = vsel %vm1473_vm15, %v1472_v33, %v3370_v55  ;;  %v1474_v36 = vsel %vm1473_vm15, %v1471_v34, %v3369_v29 }
 0x6e6   : > { %v1478_v24 = vsel %vm1476_vm0, %v1475_v35, %v3375_v30  ;;  %v1477_v37 = vsel %vm1476_vm0, %v1474_v36, %v3374_v31 }
 0x6e7   : > { %v3158_v38 = vpack.c.bf16 %v1478_v24, %v1477_v37 }
 0x6e9   : > { %3159 = vst [vmem:[#allocation2] sm:$0xff] %v3158_v38  }
 0x6f0   : > { %v3109_v39 = vld [vmem:[#allocation2] sm:$0xff] }
 0x6f1   : > { %1886 = vmatmul.bf16.vlgmr.msra.gmra.mxu0 %v3109_v39 }
 0x702   : > { %v1755_v14 = vpop.f32.mrf.mxu3 }
 0x70a   : > { %v1757_v11 = vpop.f32.mrf.mxu3 }
 0x70b   : > { %v3386_v3 = vpack.i.bf16 %v1757_v11, %v1755_v14 }
 0x70d   : > { %3387 = vrot.lane.b32.xlu0 %v3386_v3, %s3941_s3 }
 0x733   : > { %v3383_v53 = vpop.permute.xlu2 %3382 }
 0x734   : > { %v3385_v57 = vunpack.i.h.bf16 %v3383_v53  ;;  %v3384_v59 = vunpack.i.l.bf16 %v3383_v53  ;;  %v3399_v53 = vld [vmem:[%s4926_s2] ss:$0 sm:$0xff] }
 0x74c   : > { %v3378_v44 = vpop.permute.xlu1 %3377 }
 0x74d   : > { %v3380_v50 = vunpack.i.h.bf16 %v3378_v44  ;;  %v3379_v23 = vunpack.i.l.bf16 %v3378_v44 }
 0x74f   : > { %v1785_v54 = vsel %vm1178_vm13, %v1556_v49, %v3380_v50  ;;  %v1784_v56 = vsel %vm1178_vm13, %v4521_v6, %v3379_v23  ;;  %v3398_v50 = vld [vmem:[%s4925_s11] ss:$0 sm:$0xff] }
 0x750   : > { %v1786_v63 = vsel %vm1473_vm15, %v1784_v56, %v3384_v59  ;;  %v1787_v0 = vsel %vm1473_vm15, %v1785_v54, %v3385_v57 }
 0x76e   : > { %v1887_v51 = vpop.f32.mrf.mxu0 }
 0x76f   : > { %v1888_v40 = vadd.f32 %v3396_v5, %v1887_v51 }
 0x771   : > { %v1897_v32 = vadd.f32 %v3482_v58, %v1888_v40 }
 0x773   : > { %v2009_v42 = vadd.f32 %v3397_v41, %v1897_v32  ;;  %1903 = vadd.xlane.f32.xlu1 %v1897_v32 }
 0x775   : > { %2013 = vst [vmem:[#allocation4 + $0x8] sm:$0xff] %v2009_v42 }
 0x776   : > { %v1889_v45 = vpop.f32.mrf.mxu0 }
 0x777   : > { %v1890_v48 = vadd.f32 %v3396_v5, %v1889_v45 }
 0x779   : > { %v1898_v52 = vadd.f32 %v3483_v15, %v1890_v48 }
 0x77b   : > { %v2010_v16 = vadd.f32 %v3397_v41, %v1898_v52  ;;  %1905 = vadd.xlane.f32.xlu2 %v1898_v52 }
 0x77d   : > { %2014 = vst [vmem:[#allocation4] sm:$0xff] %v2010_v16 }
 0x77f   : > { %v3388_v60 = vpop.permute.xlu0 %3387 }
 0x780   : > { %v3390_v61 = vunpack.i.h.bf16 %v3388_v60  ;;  %v3389_v62 = vunpack.i.l.bf16 %v3388_v60 }
 0x782   : > { %v1789_v43 = vsel %vm1476_vm0, %v1787_v0, %v3390_v61  ;;  %v1788_v46 = vsel %vm1476_vm0, %v1786_v63, %v3389_v62 }
 0x783   : > { %v3163_v47 = vpack.c.bf16 %v1789_v43, %v1788_v46 }
 0x785   : > { %3175 = vst [vmem:[#allocation2 + $0x8] sm:$0xff] %v3163_v47  }
 0x78c   : > { %v3110_v1 = vld [vmem:[#allocation2 + $0x8] sm:$0xff] }
 0x78d   : > { %1891 = vmatmul.bf16.gmra.mxu0 %v3110_v1 }
 0x7e6   : > { %v1904_v2 = vpop.xlane.xlu1 %1903 }
 0x7e7   : > { %v1911_v4 = vmul.f32 %v1904_v2, %v4317_v10 }
 0x7e9   : > { %v1915_v6 = vsub.f32 %v1897_v32, %v1911_v4 }
 0x7eb   : > { %v1919_v7 = vmul.f32 %v1915_v6, %v1915_v6 }
 0x7ed   : > { %1923 = vadd.xlane.f32.xlu2 %v1919_v7 }
 0x7ee   : > { %v1906_v49 = vpop.xlane.xlu2 %1905 }
 0x7ef   : > { %v1912_v12 = vmul.f32 %v1906_v49, %v4317_v10 }
 0x7f1   : > { %v1916_v19 = vsub.f32 %v1898_v52, %v1912_v12 }
 0x7f3   : > { %v1920_v26 = vmul.f32 %v1916_v19, %v1916_v19 }
 0x80a   : > { %v1892_v8 = vpop.f32.mrf.mxu0 }
 0x80b   : > { %v1893_v9 = vadd.f32 %v3396_v5, %v1892_v8 }
 0x80d   : > { %v1899_v17 = vadd.f32 %v3484_v13, %v1893_v9 }
 0x80f   : > { %v2011_v18 = vadd.f32 %v3397_v41, %v1899_v17  ;;  %1907 = vadd.xlane.f32.xlu0 %v1899_v17 }
 0x811   : > { %2015 = vst [vmem:[#allocation4 + $0x10] sm:$0xff] %v2011_v18 }
 0x812   : > { %v1894_v20 = vpop.f32.mrf.mxu0 }
 0x813   : > { %v1895_v22 = vadd.f32 %v3396_v5, %v1894_v20 }
 0x815   : > { %v1900_v25 = vadd.f32 %v3485_v21, %v1895_v22 }
 0x817   : > { %v2012_v27 = vadd.f32 %v3397_v41, %v1900_v25  ;;  %1925 = vadd.xlane.f32.xlu0 %v1920_v26  ;;  %1909 = vadd.xlane.f32.xlu1 %v1900_v25 }
 0x819   : > { %2016 = vst [vmem:[#allocation4 + $0x18] sm:$0xff] %v2012_v27 }
 0x860   : > { %v1924_v28 = vpop.xlane.xlu2 %1923 }
 0x861   : > { %v1931_v55 = vmul.f32 %v1924_v28, %v4317_v10 }
 0x863   : > { %v1935_v29 = vadd.f32 1e-05, %v1931_v55 }
 0x865   : > { %3474 = vrsqrt.f32 %v1935_v29  ;;  %vm1945_vm2 = vweird.f32 %v1935_v29 }
 0x86b   : > { %v3475_v31 = vpop.eup %3474 }
 0x86c   : > { %v1940_v35 = vmul.f32 %v3475_v31, %v1935_v29  ;;  %vm1946_vm1 = vweird.f32 %v3475_v31 }
 0x86d   : > { %vm1947_vm3 = vmor %vm1945_vm2, %vm1946_vm1 }
 0x86e   : > { %v1941_v24 = vmul.f32 %v3475_v31, %v1940_v35 }
 0x870   : > { %v1942_v5 = vmul.f32 0.5, %v1941_v24 }
 0x872   : > { %v1943_v40 = vsub.f32 1.5, %v1942_v5 }
 0x874   : > { %v1944_v58 = vmul.f32 %v3475_v31, %v1943_v40 }
 0x876   : > { %v1948_v44 = vsel %vm1947_vm3, %v3475_v31, %v1944_v58 }
 0x877   : > { %v1979_v23 = vmul.f32 %v1948_v44, %v1915_v6 }
 0x879   : > { %v1986_v16 = vmul.f32 %v3398_v50, %v1979_v23 }
 0x87b   : > { %v1993_v57 = vadd.f32 %v3399_v53, %v1986_v16 }
 0x882   : > { %v1908_v30 = vpop.xlane.xlu0 %1907 }
 0x883   : > { %v1913_v33 = vmul.f32 %v1908_v30, %v4317_v10 }
 0x885   : > { %v4555_v34 = vsub.f32 %v1899_v17, %v1913_v33 }
 0x887   : > { %v1921_v36 = vmul.f32 %v4555_v34, %v4555_v34 }
 0x889   : > { %1927 = vadd.xlane.f32.xlu1 %v1921_v36 }
 0x88a   : > { %v1926_v37 = vpop.xlane.xlu0 %1925  ;;  %v1910_v38 = vpop.xlane.xlu1 %1909 }
 0x88b   : > { %v1932_v39 = vmul.f32 %v1926_v37, %v4317_v10  ;;  %v1914_v14 = vmul.f32 %v1910_v38, %v4317_v10 }
 0x88d   : > { %v1936_v11 = vadd.f32 1e-05, %v1932_v39  ;;  %v1918_v3 = vsub.f32 %v1900_v25, %v1914_v14 }
 0x88f   : > { %3476 = vrsqrt.f32 %v1936_v11  ;;  %v1922_v51 = vmul.f32 %v1918_v3, %v1918_v3  ;;  %vm1955_vm5 = vweird.f32 %v1936_v11 }
 0x891   : > { %1929 = vadd.xlane.f32.xlu2 %v1922_v51 }
 0x895   : > { %v3477_v41 = vpop.eup %3476 }
 0x896   : > { %v1950_v32 = vmul.f32 %v3477_v41, %v1936_v11  ;;  %vm1956_vm4 = vweird.f32 %v3477_v41 }
 0x897   : > { %vm1957_vm6 = vmor %vm1955_vm5, %vm1956_vm4 }
 0x898   : > { %v1951_v42 = vmul.f32 %v3477_v41, %v1950_v32 }
 0x89a   : > { %v1952_v45 = vmul.f32 0.5, %v1951_v42 }
 0x89c   : > { %v1953_v48 = vsub.f32 1.5, %v1952_v45 }
 0x89e   : > { %v1954_v15 = vmul.f32 %v3477_v41, %v1953_v48 }
 0x8a0   : > { %v1958_v52 = vsel %vm1957_vm6, %v3477_v41, %v1954_v15 }
 0x8a1   : > { %v1980_v54 = vmul.f32 %v1958_v52, %v1916_v19 }
 0x8a3   : > { %v1987_v56 = vmul.f32 %v3398_v50, %v1980_v54 }
 0x8a5   : > { %v1994_v59 = vadd.f32 %v3399_v53, %v1987_v56 }
 0x8a7   : > { %v3168_v60 = vpack.c.bf16 %v1994_v59, %v1993_v57 }
 0x8a9   : > { %3169 = vst [vmem:[#allocation3 + $0x8] sm:$0xff] %v3168_v60  }
 0x8fc   : > { %v1928_v61 = vpop.xlane.xlu1 %1927 }
 0x8fd   : > { %v1933_v62 = vmul.f32 %v1928_v61, %v4317_v10 }
 0x8ff   : > { %v1937_v63 = vadd.f32 1e-05, %v1933_v62 }
 0x901   : > { %3478 = vrsqrt.f32 %v1937_v63  ;;  %vm1965_vm8 = vweird.f32 %v1937_v63 }
 0x904   : > { %v1930_v0 = vpop.xlane.xlu2 %1929 }
 0x905   : > { %v1934_v43 = vmul.f32 %v1930_v0, %v4317_v10 }
 0x907   : > { %v3479_v46 = vpop.eup %3478  ;;  %v1938_v47 = vadd.f32 1e-05, %v1934_v43 }
 0x908   : > { %v1960_v1 = vmul.f32 %v3479_v46, %v1937_v63  ;;  %vm1966_vm7 = vweird.f32 %v3479_v46 }
 0x909   : > { %3480 = vrsqrt.f32 %v1938_v47  ;;  %vm1967_vm9 = vmor %vm1965_vm8, %vm1966_vm7  ;;  %vm1975_vm11 = vweird.f32 %v1938_v47 }
 0x90a   : > { %v1961_v2 = vmul.f32 %v3479_v46, %v1960_v1 }
 0x90c   : > { %v1962_v4 = vmul.f32 0.5, %v1961_v2 }
 0x90e   : > { %v1963_v6 = vsub.f32 1.5, %v1962_v4 }
 0x90f   : > { %v3481_v7 = vpop.eup %3480 }
 0x910   : > { %v1964_v49 = vmul.f32 %v3479_v46, %v1963_v6  ;;  %v1970_v8 = vmul.f32 %v3481_v7, %v1938_v47  ;;  %vm1976_vm10 = vweird.f32 %v3481_v7 }
 0x911   : > { %vm1977_vm12 = vmor %vm1975_vm11, %vm1976_vm10 }
 0x912   : > { %v1971_v9 = vmul.f32 %v3481_v7, %v1970_v8  ;;  %v1968_v12 = vsel %vm1967_vm9, %v3479_v46, %v1964_v49 }
 0x913   : > { %v1981_v10 = vmul.f32 %v1968_v12, %v4555_v34 }
 0x914   : > { %v1972_v13 = vmul.f32 0.5, %v1971_v9 }
 0x915   : > { %v1988_v20 = vmul.f32 %v3398_v50, %v1981_v10 }
 0x916   : > { %v1973_v17 = vsub.f32 1.5, %v1972_v13 }
 0x917   : > { %v1995_v25 = vadd.f32 %v3399_v53, %v1988_v20 }
 0x918   : > { %v1974_v18 = vmul.f32 %v3481_v7, %v1973_v17 }
 0x91a   : > { %v1978_v19 = vsel %vm1977_vm12, %v3481_v7, %v1974_v18 }
 0x91b   : > { %v1982_v22 = vmul.f32 %v1978_v19, %v1918_v3 }
 0x91d   : > { %v1989_v21 = vmul.f32 %v3398_v50, %v1982_v22 }
 0x91f   : > { %v1996_v26 = vadd.f32 %v3399_v53, %v1989_v21 }
 0x921   : > { %v3173_v27 = vpack.c.bf16 %v1996_v26, %v1995_v25 }
 0x923   : > { %3176 = vst [vmem:[#allocation3] sm:$0xff] %v3173_v27  }
 0x924 PF: > { %v2996_v28 = vld [vmem:[%s4295_s4 + $0x70] sm:$0xf]  ;;  %v3136_v55 = vld [vmem:[%s4295_s4 + $0x74] sm:$0xf0]  ;;  %v3135_v29 = vld [vmem:[%s4295_s4 + $0x74] sm:$0xf] }
 0x925   : > { %v2997_v30 = vor.u32 %v3136_v55, %v2996_v28  ;;  %v2998_v31 = vld [vmem:[%s4295_s4 + $0x78] sm:$0xf0]  ;;  %v2988_v33 = vld [vmem:[%s4295_s4 + $0x60] sm:$0xf]  ;;  %v3134_v34 = vld [vmem:[%s4295_s4 + $0x64] sm:$0xf0] }
 0x926   : > { %v3001_v35 = vor.u32 %v3135_v29, %v2998_v31  ;;  %v3133_v36 = vld [vmem:[%s4295_s4 + $0x64] sm:$0xf]  ;;  %v2990_v24 = vld [vmem:[%s4295_s4 + $0x68] sm:$0xf0]  ;;  %v2989_v37 = vor.u32 %v3134_v34, %v2988_v33  ;;  %v2980_v39 = vld [vmem:[%s4295_s4 + $0x50] sm:$0xf] }
 0x927   : > { %2135 = vmatpush.bf16.msra.mxu0 %v2997_v30  ;;  %v2993_v38 = vor.u32 %v3133_v36, %v2990_v24  ;;  %v3132_v14 = vld [vmem:[%s4295_s4 + $0x54] sm:$0xf0]  ;;  %v3131_v11 = vld [vmem:[%s4295_s4 + $0x54] sm:$0xf]  ;;  %v2982_v3 = vld [vmem:[%s4295_s4 + $0x58] sm:$0xf0] }
 0x928   : > { %2154 = vmatpush.bf16.msra.mxu1 %v3001_v35  ;;  %v2981_v5 = vor.u32 %v3132_v14, %v2980_v39  ;;  %v2985_v51 = vor.u32 %v3131_v11, %v2982_v3  ;;  %v2972_v40 = vld [vmem:[%s4295_s4 + $0x40] sm:$0xf]  ;;  %v3130_v41 = vld [vmem:[%s4295_s4 + $0x44] sm:$0xf0]  ;;  %v3129_v58 = vld [vmem:[%s4295_s4 + $0x44] sm:$0xf] }
 0x929   : > { %v2974_v32 = vld [vmem:[%s4295_s4 + $0x48] sm:$0xf0]  ;;  %v2973_v42 = vor.u32 %v3130_v41, %v2972_v40  ;;  %v2964_v45 = vld [vmem:[%s4295_s4 + $0x30] sm:$0xf]  ;;  %v3128_v48 = vld [vmem:[%s4295_s4 + $0x34] sm:$0xf0] }
 0x92a   : > { %v2977_v44 = vor.u32 %v3129_v58, %v2974_v32  ;;  %v3127_v50 = vld [vmem:[%s4295_s4 + $0x34] sm:$0xf]  ;;  %v2966_v23 = vld [vmem:[%s4295_s4 + $0x38] sm:$0xf0]  ;;  %v2965_v15 = vor.u32 %v3128_v48, %v2964_v45  ;;  %v2956_v53 = vld [vmem:[%s4295_s4 + $0x20] sm:$0xf] }
 0x92b   : > { %2136 = vmatpush.bf16.msra.mxu0 %v2989_v37  ;;  %v2969_v52 = vor.u32 %v3127_v50, %v2966_v23  ;;  %v3126_v16 = vld [vmem:[%s4295_s4 + $0x24] sm:$0xf0]  ;;  %v3125_v54 = vld [vmem:[%s4295_s4 + $0x24] sm:$0xf]  ;;  %v2958_v56 = vld [vmem:[%s4295_s4 + $0x28] sm:$0xf0] }
 0x92c   : > { %2155 = vmatpush.bf16.msra.mxu1 %v2993_v38  ;;  %v2957_v57 = vor.u32 %v3126_v16, %v2956_v53  ;;  %v2961_v59 = vor.u32 %v3125_v54, %v2958_v56  ;;  %v2948_v60 = vld [vmem:[%s4295_s4 + $0x10] sm:$0xf]  ;;  %v3124_v61 = vld [vmem:[%s4295_s4 + $0x14] sm:$0xf0]  ;;  %v3123_v62 = vld [vmem:[%s4295_s4 + $0x14] sm:$0xf] }
 0x92d   : > { %v2950_v63 = vld [vmem:[%s4295_s4 + $0x18] sm:$0xf0]  ;;  %v2949_v0 = vor.u32 %v3124_v61, %v2948_v60  ;;  %v2940_v46 = vld [vmem:[%s4295_s4] sm:$0xf]  ;;  %v3122_v47 = vld [vmem:[%s4295_s4 + $0x4] sm:$0xf0] }
 0x92e   : > { %v2953_v43 = vor.u32 %v3123_v62, %v2950_v63  ;;  %v3121_v1 = vld [vmem:[%s4295_s4 + $0x4] sm:$0xf]  ;;  %v2942_v2 = vld [vmem:[%s4295_s4 + $0x8] sm:$0xf0]  ;;  %v2941_v4 = vor.u32 %v3122_v47, %v2940_v46  ;;  %v3119_v7 = vld [vmem:[#allocation3 + $0x8] sm:$0xff]  ;;  %s4940_s0 = sld [smem:[#allocation30_spill]] }
 0x92f   : > { %2137 = vmatpush.bf16.msra.mxu0 %v2981_v5  ;;  %v2945_v6 = vor.u32 %v3121_v1, %v2942_v2  ;;  %v3120_v49 = vld [vmem:[#allocation3] sm:$0xff]  ;;  %v3144_v8 = vld [vmem:[%s4308_s21 + $0x38] sm:$0xff]  ;;  %v3141_v22 = vld [vmem:[%s4308_s21 + $0x20] sm:$0xff] }
 0x930   : > { %2156 = vmatpush.bf16.msra.mxu1 %v2985_v51  ;;  %v3152_v9 = vld [vmem:[%s4308_s21 + $0x78] sm:$0xff]  ;;  %2477 = vmatpush.bf16.msra.mxu2 %v3144_v8  ;;  %v3143_v12 = vld [vmem:[%s4308_s21 + $0x30] sm:$0xff]  ;;  %v3142_v10 = vld [vmem:[%s4308_s21 + $0x28] sm:$0xff] }
 0x931   : > { %2496 = vmatpush.bf16.msra.mxu3 %v3152_v9  ;;  %v3151_v13 = vld [vmem:[%s4308_s21 + $0x70] sm:$0xff]  ;;  %v2037_v17 = vld [vmem:[%s777_s20] sm:$0x3]  ;;  %v3150_v18 = vld [vmem:[%s4308_s21 + $0x68] sm:$0xff] }
 0x932   : > { %v4613_v19 = vperm.slane %v2037_v17, 0  ;;  %v4615_v20 = vperm.slane %v2037_v17, 1  ;;  %v3149_v21 = vld [vmem:[%s4308_s21 + $0x60] sm:$0xff]  ;;  %v3140_v29 = vld [vmem:[%s4308_s21 + $0x18] sm:$0xff]  ;;  %v3139_v35 = vld [vmem:[%s4308_s21 + $0x10] sm:$0xff] }
 0x933   : > { %2138 = vmatpush.bf16.msra.mxu0 %v2973_v42  ;;  %v3148_v30 = vld [vmem:[%s4308_s21 + $0x58] sm:$0xff]  ;;  %v3147_v36 = vld [vmem:[%s4308_s21 + $0x50] sm:$0xff]  ;;  %v3138_v11 = vld [vmem:[%s4308_s21 + $0x8] sm:$0xff] }
 0x934   : > { %2157 = vmatpush.bf16.msra.mxu1 %v2977_v44  ;;  %2478 = vmatpush.bf16.msra.mxu2 %v3143_v12  ;;  %v3146_v3 = vld [vmem:[%s4308_s21 + $0x48] sm:$0xff]  ;;  %v3137_v44 = vld [vmem:[%s4308_s21] sm:$0xff]  ;;  %p3074_p13 = scmp.ne.s32.totalorder %s4940_s0, 1 }
 0x935   : > { %2497 = vmatpush.bf16.msra.mxu3 %v3151_v13  ;;  %v3145_v45 = vld [vmem:[%s4308_s21 + $0x40] sm:$0xff] }
 0x937   : > { %2139 = vmatpush.bf16.msra.mxu0 %v2965_v15 }
 0x938   : > { %2158 = vmatpush.bf16.msra.mxu1 %v2969_v52  ;;  %2479 = vmatpush.bf16.msra.mxu2 %v3142_v10 }
 0x939   : > { %2498 = vmatpush.bf16.msra.mxu3 %v3150_v18 }
 0x93b   : > { %2140 = vmatpush.bf16.msra.mxu0 %v2957_v57 }
 0x93c   : > { %2159 = vmatpush.bf16.msra.mxu1 %v2961_v59  ;;  %2480 = vmatpush.bf16.msra.mxu2 %v3141_v22 }
 0x93d   : > { %2499 = vmatpush.bf16.msra.mxu3 %v3149_v21 }
 0x93f   : > { %2141 = vmatpush.bf16.msra.mxu0 %v2949_v0 }
 0x940   : > { %2160 = vmatpush.bf16.msra.mxu1 %v2953_v43  ;;  %2481 = vmatpush.bf16.msra.mxu2 %v3140_v29 }
 0x941   : > { %2500 = vmatpush.bf16.msra.mxu3 %v3148_v30 }
 0x943   : > { %2142 = vmatpush.bf16.msra.mxu0 %v2941_v4 }
 0x944   : > { %2161 = vmatpush.bf16.msra.mxu1 %v2945_v6  ;;  %2482 = vmatpush.bf16.msra.mxu2 %v3139_v35 }
 0x945   : > { %2501 = vmatpush.bf16.msra.mxu3 %v3147_v36 }
 0x946   : > { %2143 = vmatmul.bf16.vlgmr.msra.gmra.mxu0 %v3119_v7 }
 0x947   : > { %2162 = vmatmul.bf16.vlgmr.msra.gmra.mxu1 %v3119_v7 }
 0x948   : > { %2483 = vmatpush.bf16.msra.mxu2 %v3138_v11 }
 0x949   : > { %2502 = vmatpush.bf16.msra.mxu3 %v3146_v3 }
 0x94c   : > { %2484 = vmatpush.bf16.msra.mxu2 %v3137_v44 }
 0x94d   : > { %2503 = vmatpush.bf16.msra.mxu3 %v3145_v45 }
 0x956   : > { %2148 = vmatmul.bf16.gmra.mxu0 %v3120_v49 }
 0x957   : > { %2167 = vmatmul.bf16.gmra.mxu1 %v3120_v49 }
 0x9c3   : > { %v2144_v25 = vpop.f32.mrf.mxu0 }
 0x9c4   : > { %v4620_v26 = vadd.f32 %v2144_v25, %v4613_v19  ;;  %v2163_v27 = vpop.f32.mrf.mxu1 }
 0x9c5   : > { %v4623_v28 = vadd.f32 %v2163_v27, %v4615_v20 }
 0x9c6   : > { %v3002_v55 = vmul.f32 -1.702, %v4620_v26 }
 0x9c7   : > { %v3003_v31 = vmul.f32 -1.702, %v4623_v28 }
 0x9c8   : > { %v2189_v33 = vmul.f32 1.442695, %v3002_v55 }
 0x9c9   : > { %v2191_v34 = vmul.f32 1.442695, %v3003_v31 }
 0x9ca   : > { %3486 = vpow2.f32 %v2189_v33 }
 0x9cb   : > { %3488 = vpow2.f32 %v2191_v34  ;;  %v2146_v24 = vpop.f32.mrf.mxu0 }
 0x9cc   : > { %v4632_v37 = vadd.f32 %v2146_v24, %v4613_v19  ;;  %v2165_v38 = vpop.f32.mrf.mxu1 }
 0x9cd   : > { %v4635_v39 = vadd.f32 %v2165_v38, %v4615_v20 }
 0x9ce   : > { %v3004_v14 = vmul.f32 -1.702, %v4632_v37 }
 0x9cf   : > { %v3005_v5 = vmul.f32 -1.702, %v4635_v39 }
 0x9d0   : > { %v3487_v51 = vpop.eup %3486  ;;  %v2193_v40 = vmul.f32 1.442695, %v3004_v14 }
 0x9d1   : > { %v3489_v41 = vpop.eup %3488  ;;  %v4641_v58 = vadd.f32 1.0, %v3487_v51  ;;  %v2195_v32 = vmul.f32 1.442695, %v3005_v5 }
 0x9d2   : > { %v4643_v42 = vadd.f32 1.0, %v3489_v41  ;;  %3490 = vpow2.f32 %v2193_v40 }
 0x9d3   : > { %3492 = vrcp.f32 %v4641_v58  ;;  %v2149_v48 = vpop.f32.mrf.mxu0  ;;  %v2222_v6 = vand.u32 2147483647, %v4641_v58  ;;  %v2224_v7 = vand.u32 2147483648, %v4641_v58  ;;  %vm2218_vm13 = vweird.f32 %v4641_v58 }
 0x9d4   : > { %3494 = vrcp.f32 %v4643_v42  ;;  %v2168_v50 = vpop.f32.mrf.mxu1  ;;  %v4650_v23 = vadd.f32 %v2149_v48, %v4613_v19  ;;  %vm2233_vm14 = vweird.f32 %v4643_v42  ;;  %v2237_v13 = vand.u32 2147483647, %v4643_v42 }
 0x9d5   : > { %3496 = vpow2.f32 %v2195_v32  ;;  %v4653_v15 = vadd.f32 %v2168_v50, %v4615_v20  ;;  %v2239_v10 = vand.u32 2147483648, %v4643_v42  ;;  %vm4689_vm0 = vcmp.eq.f32.partialorder %v2222_v6, 8.507059e+37 }
 0x9d6   : > { %v3006_v52 = vmul.f32 -1.702, %v4650_v23  ;;  %v2225_v21 = vor.u32 1.1754944e-38, %v2224_v7  ;;  %vm2238_vm10 = vcmp.eq.f32.partialorder %v2237_v13, 8.507059e+37 }
 0x9d7   : > { %v3007_v16 = vmul.f32 -1.702, %v4653_v15 }
 0x9d8   : > { %v3491_v53 = vpop.eup %3490  ;;  %v2197_v57 = vmul.f32 1.442695, %v3006_v52 }
 0x9d9   : > { %v4657_v54 = vpop.eup %3492  ;;  %v4659_v56 = vadd.f32 1.0, %v3491_v53  ;;  %v2199_v46 = vmul.f32 1.442695, %v3007_v16 }
 0x9da   : > { %v4661_v59 = vpop.eup %3494  ;;  %v2214_v60 = vmul.f32 %v4657_v54, %v4641_v58  ;;  %vm2219_vm15 = vweird.f32 %v4657_v54 }
 0x9db   : > { %v3497_v61 = vpop.eup %3496  ;;  %v2229_v62 = vmul.f32 %v4661_v59, %v4643_v42  ;;  %3498 = vrcp.f32 %v4659_v56  ;;  %v2151_v63 = vpop.f32.mrf.mxu0  ;;  %v2254_v30 = vand.u32 2147483648, %v4659_v56  ;;  %vm2234_vm1 = vweird.f32 %v4661_v59  ;;  %vm4706_vm3 = vmor %vm2218_vm13, %vm2219_vm15 }
 0x9dc   : > { %v2215_v0 = vsub.f32 1.0, %v2214_v60  ;;  %v4668_v43 = vadd.f32 1.0, %v3497_v61  ;;  %v2170_v47 = vpop.f32.mrf.mxu1  ;;  %3500 = vpow2.f32 %v2197_v57  ;;  %v4671_v1 = vadd.f32 %v2151_v63, %v4613_v19  ;;  %vm4720_vm5 = vmor %vm2233_vm14, %vm2234_vm1 }
 0x9dd   : > { %v4674_v2 = vadd.f32 %v2170_v47, %v4615_v20  ;;  %v2230_v4 = vsub.f32 1.0, %v2229_v62  ;;  %v2252_v33 = vand.u32 2147483647, %v4659_v56  ;;  %vm2248_vm4 = vweird.f32 %v4659_v56 }
 0x9de   : > { %3502 = vrcp.f32 %v4668_v43  ;;  %v2216_v49 = vmul.f32 %v4657_v54, %v2215_v0  ;;  %v3008_v8 = vmul.f32 -1.702, %v4671_v1  ;;  %v2255_v40 = vor.u32 1.1754944e-38, %v2254_v30 }
 0x9df   : > { %3504 = vpow2.f32 %v2199_v46  ;;  %v3009_v9 = vmul.f32 -1.702, %v4674_v2  ;;  %v2231_v17 = vmul.f32 %v4661_v59, %v2230_v4  ;;  %v2269_v41 = vand.u32 2147483648, %v4668_v43 }
 0x9e0   : > { %v2201_v19 = vmul.f32 1.442695, %v3008_v8  ;;  %v2217_v55 = vadd.f32 %v4657_v54, %v2216_v49  ;;  %v2267_v32 = vand.u32 2147483647, %v4668_v43  ;;  %v2240_v42 = vor.u32 1.1754944e-38, %v2239_v10 }
 0x9e1   : > { %v3499_v12 = vpop.eup %3498  ;;  %v2203_v25 = vmul.f32 1.442695, %v3009_v9  ;;  %v2232_v36 = vadd.f32 %v4661_v59, %v2231_v17  ;;  %vm2253_vm8 = vcmp.eq.f32.partialorder %v2252_v33, 8.507059e+37  ;;  %vm2263_vm9 = vweird.f32 %v4668_v43 }
 0x9e2   : > { %v2244_v18 = vmul.f32 %v3499_v12, %v4659_v56  ;;  %v3501_v20 = vpop.eup %3500  ;;  %3506 = vpow2.f32 %v2201_v19  ;;  %vm2249_vm2 = vweird.f32 %v3499_v12  ;;  %v2221_v3 = vsel %vm4706_vm3, %v4657_v54, %v2217_v55 }
 0x9e3   : > { %v4695_v31 = vadd.f32 1.0, %v3501_v20  ;;  %vm2250_vm6 = vmor %vm2248_vm4, %vm2249_vm2  ;;  %v2236_v44 = vsel %vm4720_vm5, %v4661_v59, %v2232_v36  ;;  %v2226_v50 = vsel %vm4689_vm0, %v2225_v21, %v2221_v3  ;;  %v2270_v56 = vor.u32 1.1754944e-38, %v2269_v41 }
 0x9e4   : > { %v3503_v27 = vpop.eup %3502  ;;  %v2245_v29 = vsub.f32 1.0, %v2244_v18  ;;  %v2241_v60 = vsel %vm2238_vm10, %v2240_v42, %v2236_v44  ;;  %vm2268_vm12 = vcmp.eq.f32.partialorder %v2267_v32, 8.507059e+37  ;;  %v2333_v63 = vmul.f32 %v2226_v50, %v4620_v26 }
 0x9e5   : > { %v2259_v34 = vmul.f32 %v3503_v27, %v4668_v43  ;;  %v3505_v35 = vpop.eup %3504  ;;  %3508 = vrcp.f32 %v4695_v31  ;;  %vm2264_vm7 = vweird.f32 %v3503_v27  ;;  %v2284_v26 = vand.u32 2147483648, %v4695_v31 }
 0x9e6   : > { %v2246_v24 = vmul.f32 %v3499_v12, %v2245_v29  ;;  %v4711_v11 = vadd.f32 1.0, %v3505_v35  ;;  %3510 = vpow2.f32 %v2203_v25  ;;  %vm2265_vm11 = vmor %vm2263_vm9, %vm2264_vm7  ;;  %vm2278_vm14 = vweird.f32 %v4695_v31 }
 0x9e7   : > { %v2260_v14 = vsub.f32 1.0, %v2259_v34  ;;  %v2285_v19 = vor.u32 1.1754944e-38, %v2284_v26 }
 0x9e8   : > { %v2247_v51 = vadd.f32 %v3499_v12, %v2246_v24  ;;  %3512 = vrcp.f32 %v4711_v11  ;;  %v3507_v48 = vpop.eup %3506  ;;  %vm2293_vm3 = vweird.f32 %v4711_v11  ;;  %v2297_v33 = vand.u32 2147483647, %v4711_v11 }
 0x9e9   : > { %v2261_v58 = vmul.f32 %v3503_v27, %v2260_v14  ;;  %v2211_v57 = vadd.f32 1.0, %v3507_v48 }
 0x9ea   : > { %v2251_v45 = vsel %vm2250_vm6, %v3499_v12, %v2247_v51  ;;  %v2282_v12 = vand.u32 2147483647, %v4695_v31  ;;  %vm2298_vm9 = vcmp.eq.f32.partialorder %v2297_v33, 8.507059e+37 }
 0x9eb   : > { %v2256_v52 = vsel %vm2253_vm8, %v2255_v40, %v2251_v45  ;;  %v2262_v53 = vadd.f32 %v3503_v27, %v2261_v58  ;;  %v3509_v16 = vpop.eup %3508  ;;  %3514 = vrcp.f32 %v2211_v57  ;;  %v2314_v22 = vand.u32 2147483648, %v2211_v57 }
 0x9ec   : > { %v2335_v54 = vmul.f32 %v2256_v52, %v4632_v37  ;;  %v3511_v59 = vpop.eup %3510  ;;  %v2274_v62 = vmul.f32 %v3509_v16, %v4695_v31  ;;  %v2334_v37 = vmul.f32 %v2241_v60, %v4623_v28  ;;  %vm2279_vm13 = vweird.f32 %v3509_v16 }
 0x9ed   : > { %v2266_v61 = vsel %vm2265_vm11, %v3503_v27, %v2262_v53  ;;  %v2212_v4 = vadd.f32 1.0, %v3511_v59  ;;  %vm4743_vm15 = vcmp.eq.f32.partialorder %v2282_v12, 8.507059e+37  ;;  %vm4747_vm0 = vmor %vm2278_vm14, %vm2279_vm13  ;;  %v2299_v27 = vand.u32 2147483648, %v4711_v11 }
 0x9ee   : > { %v2271_v0 = vsel %vm2268_vm12, %v2270_v56, %v2266_v61  ;;  %v3513_v46 = vpop.eup %3512  ;;  %v2275_v47 = vsub.f32 1.0, %v2274_v62  ;;  %v2345_v7 = vpack.c.bf16 %v2335_v54, %v2333_v63  ;;  %v2312_v31 = vand.u32 2147483647, %v2211_v57  ;;  %v2342_v61 = vld [vmem:[#allocation4] sm:$0xff] }
 0x9ef   : > { %v2336_v43 = vmul.f32 %v2271_v0, %v4635_v39  ;;  %v2289_v6 = vmul.f32 %v3513_v46, %v4711_v11  ;;  %3516 = vrcp.f32 %v2212_v4  ;;  %vm2294_vm1 = vweird.f32 %v3513_v46 }
 0x9f0   : > { %v2276_v49 = vmul.f32 %v3509_v16, %v2275_v47  ;;  %2485 = vmatmul.bf16.vlgmr.msra.gmra.mxu2 %v2345_v7  ;;  %vm2308_vm4 = vweird.f32 %v2211_v57  ;;  %vm4756_vm5 = vmor %vm2293_vm3, %vm2294_vm1  ;;  %v2315_v24 = vor.u32 1.1754944e-38, %v2314_v22  ;;  %v2327_v38 = vand.u32 2147483647, %v2212_v4 }
 0x9f1   : > { %v2290_v8 = vsub.f32 1.0, %v2289_v6  ;;  %v2346_v9 = vpack.c.bf16 %v2336_v43, %v2334_v37  ;;  %v3515_v13 = vpop.eup %3514  ;;  %v2329_v14 = vand.u32 2147483648, %v2212_v4  ;;  %v2300_v11 = vor.u32 1.1754944e-38, %v2299_v27  ;;  %v2343_v43 = vld [vmem:[#allocation4 + $0x10] sm:$0xff]  ;;  %v2344_v37 = vld [vmem:[#allocation4 + $0x18] sm:$0xff] }
 0x9f2   : > { %v2277_v39 = vadd.f32 %v3509_v16, %v2276_v49  ;;  %v2304_v10 = vmul.f32 %v3515_v13, %v2211_v57  ;;  %vm2309_vm2 = vweird.f32 %v3515_v13  ;;  %vm2313_vm8 = vcmp.eq.f32.partialorder %v2312_v31, 8.507059e+37  ;;  %v2341_v57 = vld [vmem:[#allocation4 + $0x8] sm:$0xff] }
 0x9f3   : > { %v2291_v17 = vmul.f32 %v3513_v46, %v2290_v8  ;;  %2504 = vmatmul.bf16.vlgmr.msra.gmra.mxu3 %v2346_v9  ;;  %vm2310_vm6 = vmor %vm2308_vm4, %vm2309_vm2  ;;  %vm2323_vm10 = vweird.f32 %v2212_v4  ;;  %v2330_v45 = vor.u32 1.1754944e-38, %v2329_v14  ;;  %vm2328_vm12 = vcmp.eq.f32.partialorder %v2327_v38, 8.507059e+37 }
 0x9f4   : > { %v2305_v20 = vsub.f32 1.0, %v2304_v10  ;;  %v2281_v29 = vsel %vm4747_vm0, %v3509_v16, %v2277_v39 }
 0x9f5   : > { %v3517_v28 = vpop.eup %3516  ;;  %v2292_v25 = vadd.f32 %v3513_v46, %v2291_v17  ;;  %v2286_v3 = vsel %vm4743_vm15, %v2285_v19, %v2281_v29 }
 0x9f6   : > { %v2319_v55 = vmul.f32 %v3517_v28, %v2212_v4  ;;  %v2306_v30 = vmul.f32 %v3515_v13, %v2305_v20  ;;  %vm2324_vm7 = vweird.f32 %v3517_v28  ;;  %v2337_v32 = vmul.f32 %v2286_v3, %v4650_v23 }
 0x9f7   : > { %v2296_v5 = vsel %vm4756_vm5, %v3513_v46, %v2292_v25  ;;  %vm2325_vm11 = vmor %vm2323_vm10, %vm2324_vm7 }
 0x9f8   : > { %v2320_v34 = vsub.f32 1.0, %v2319_v55  ;;  %v2307_v36 = vadd.f32 %v3515_v13, %v2306_v30  ;;  %v2301_v44 = vsel %vm2298_vm9, %v2300_v11, %v2296_v5 }
 0x9f9   : > { %v2338_v53 = vmul.f32 %v2301_v44, %v4653_v15 }
 0x9fa   : > { %v2321_v51 = vmul.f32 %v3517_v28, %v2320_v34  ;;  %v2311_v40 = vsel %vm2310_vm6, %v3515_v13, %v2307_v36 }
 0x9fb   : > { %v2316_v41 = vsel %vm2313_vm8, %v2315_v24, %v2311_v40 }
 0x9fc   : > { %v2322_v58 = vadd.f32 %v3517_v28, %v2321_v51  ;;  %v2339_v42 = vmul.f32 %v2316_v41, %v4671_v1 }
 0x9fe   : > { %v2326_v48 = vsel %vm2325_vm11, %v3517_v28, %v2322_v58  ;;  %v2347_v52 = vpack.c.bf16 %v2339_v42, %v2337_v32 }
 0x9ff   : > { %v2331_v50 = vsel %vm2328_vm12, %v2330_v45, %v2326_v48 }
 0xa00   : > { %v2340_v16 = vmul.f32 %v2331_v50, %v4674_v2  ;;  %2490 = vmatmul.bf16.gmra.mxu2 %v2347_v52 }
 0xa02   : > { %v2348_v54 = vpack.c.bf16 %v2340_v16, %v2338_v53 }
 0xa04   : > { %2509 = vmatmul.bf16.gmra.mxu3 %v2348_v54 }
 0xa73   : > { %v2486_v56 = vpop.f32.mrf.mxu2 }
 0xa76   : > { %v2505_v59 = vpop.f32.mrf.mxu3 }
 0xa77   : > { %v2506_v23 = vadd.f32 %v2505_v59, %v2486_v56 }
 0xa79   : > { %v2515_v60 = vadd.f32 %v2506_v23, %v2341_v57 }
 0xa7b   : > { %2519 = vst [vmem:[#allocation4 + $0x8] sm:$0xff] %v2515_v60  ;;  %v2488_v1 = vpop.f32.mrf.mxu2 }
 0xa7e   : > { %v2507_v62 = vpop.f32.mrf.mxu3 }
 0xa7f   : > { %v2508_v63 = vadd.f32 %v2507_v62, %v2488_v1 }
 0xa81   : > { %v2516_v0 = vadd.f32 %v2508_v63, %v2342_v61 }
 0xa83   : > { %2520 = vst [vmem:[#allocation4] sm:$0xff] %v2516_v0  ;;  %v2491_v46 = vpop.f32.mrf.mxu2 }
 0xa87   : > { %v2510_v15 = vpop.f32.mrf.mxu3 }
 0xa88   : > { %v2511_v47 = vadd.f32 %v2510_v15, %v2491_v46 }
 0xa8a   : > { %v2517_v2 = vadd.f32 %v2511_v47, %v2343_v43 }
 0xa8b   : > { %v2493_v4 = vpop.f32.mrf.mxu2 }
 0xa8c   : > { %2521 = vst [vmem:[#allocation4 + $0x10] sm:$0xff] %v2517_v2 }
 0xa8f   : > { %v2512_v6 = vpop.f32.mrf.mxu3 }
 0xa90   : > { %v2513_v7 = vadd.f32 %v2512_v6, %v2493_v4  ;;  %2526 = sbr.rel (%p3074_p13) target bundleno = 2717 (0xa9d), region = 132 }
 0xa92   : > { %v2518_v49 = vadd.f32 %v2513_v7, %v2344_v37 }
 0xa94   : > { %2522 = vst [vmem:[#allocation4 + $0x18] sm:$0xff] %v2518_v49 }
 0xa95   : > { %v2527_v8 = vld [vmem:[#allocation4 + $0x8] sm:$0xff]  ;;  %v2528_v9 = vld [vmem:[#allocation4] sm:$0xff]  ;;  %v2529_v12 = vld [vmem:[#allocation4 + $0x10] sm:$0xff] }
 0xa96   : > { %2531 = vst [vmem:[%s4310_s24] sm:$0xff] %v2527_v8 }
 0xa97   : > { %2532 = vst [vmem:[%s4310_s24 + $0x8] sm:$0xff] %v2528_v9 }
 0xa98   : > { %2533 = vst [vmem:[%s4310_s24 + $0x10] sm:$0xff] %v2529_v12 }
 0xa9b   : > { %v2530_v26 = vld [vmem:[#allocation4 + $0x18] sm:$0xff] }
 0xa9c   : > { %2534 = vst [vmem:[%s4310_s24 + $0x18] sm:$0xff] %v2530_v26 }
 0xa9d PF: > { %s4941_s20 = sld [smem:[#allocation31_spill]]  ;;  %s2549_s22 = sshll.u32 %s4310_s24, 4  ;;  %s2550_s22 = int_to_ptr.vmem [resolvable:$true] %s2549_s22 }
 0xa9e   : > { %s4943_s19 = sld [smem:[#allocation56_spill]]  ;;  %s2536_s8 = scalar_lea.sflag [#allocation7], %s4271_s27 }
 0xaa3   : > { %s3154_s9 = sshll.u32 %s4941_s20, 5 }
 0xaa4   : > { %s4944_s3 = smov %s4943_s19  ;;  %s2548_s30 = scalar_lea.hbm %s4943_s19, %s3154_s9 }
 0xaa5   : > { %s2551_s23 = sshll.u32 %s2548_s30, 4  ;;  %s3808_s12 = scalar_lea.hbm %s4944_s3, 64  ;;  %s2552_s23 = int_to_ptr.hbm [resolvable:$true] %s2551_s23 }
 0xaa6   : > { %s3802_s17 = sshra.s32 %s2552_s23, 4  ;;  %s3803_s17 = int_to_ptr.hbm [resolvable:$true] %s3802_s17 }
 0xaa7   : > { %s3804_s13 = scalar_lea.hbm %s3803_s17, 32  ;;  %p3809_p10 = scmp.lt.s32.totalorder %s3803_s17, %s4944_s3 }
 0xaa8   : > { %p3805_p0 = scmp.ne.s32.totalorder %s3803_s17, %s3804_s13  ;;  %p3810_p12 = scmp.lt.s32.totalorder %s3808_s12, %s3804_s13 }
 0xaaa   : > { %p3806_p8 = pnand %p3805_p0, %p4232_p5  ;;  %p3811_p6 = por %p3810_p12, %p3809_p10 }
 0xaac   : > { %p3807_p9 = pneg %p3806_p8 }
 0xaae   : > { %p3812_p7 = pnand %p3811_p6, %p3807_p9 }
 0xab0   : > { %3815 = shalt.err (!%p3812_p7)
}
 0xab1   : > { %s3943_s27 = smov 128   ;;  %s3944_s24 = smov 8  }
 0xab2   : > { %3207 = dma.vmem_to_hbm [thread:$0]  (%p4232_p5), %s2550_s22, 512, %s2552_s23, %s2536_s8, %s3943_s27, %s3943_s27, %s3944_s24  }
 0xab3 PF: > { %s4945_s6 = sld [smem:[#allocation28_spill]]  ;;  %p3255_p2 = scmp.ge.s32.totalorder %s3926_s1, 2 }
 0xab5   : > { %p3239_p4 = pnand %p3255_p2, %p4239_p11 }
 0xab7   : > { %p3240_p3 = pneg %p3239_p4 }
 0xab9   : > { %s2566_s4 = sand.u32 1, %s4945_s6  }
 0xaba   : > { %s2567_s5 = scalar_lea.sflag [#allocation7], %s2566_s4 }
 0xabb   : > { %3881 = dma.done.wait (%p3240_p3), %s2567_s5, 512  }
 0xabc   : > { %3883 = vsyncadd (%p3240_p3), %s2567_s5, 4294966784  ;;  %s39_s1 = sadd.s32 1, %s3926_s1   ;;  %s4947_s7 = sld [smem:[#allocation27_spill]] }
 0xabd   : > { %p36_p1 = scmp.ge.s32.totalorder %s39_s1, 6   ;;  %s4948_s26 = sld [smem:[#allocation35_spill]] }
 0xabe   : > { %s4949_s0 = sld [smem:[#allocation29_spill]]  ;;  %s4954_s24 = smov %s3890_s25 }
 0xabf   : > { %s4950_s29 = sld [smem:[#allocation39_spill]]  ;;  %s4956_s27 = smov %s3902_s28 }
 0xac0   : > { %s4951_s30 = sld [smem:[#allocation32_spill]] }
 0xac1   : > { %s4952_s20 = sld [smem:[#allocation33_spill]] }
 0xac2   : > { %s4953_s19 = sld [smem:[#allocation36_spill]]  ;;  %s4955_s25 = smov %s4947_s7 }
 0xac3   :  { %38 = sbr.rel (!%p36_p1) target bundleno = 32 (0x20), region = 192 }
 0xac4   : > { %s4957_s28 = smov %s4949_s0  ;;  %s4958_s0 = smov %s3918_s18 }
 0xac7   : > { %s4959_s18 = smov %s4952_s20 }
 0xac8   :  { %2573 = vsyncpa [#allocation6], 1 }
 0xac9   :  { %2575 = vsyncpa [#allocation6 + $0x1], 1 }
 0xaca   :  { %2576 = vsyncpa [#allocation9], 1 }
 0xacb   :  { %2577 = vsyncpa [#allocation12], 1 }
 0xacc   :  { %2578 = vsyncpa [#allocation15], 1 }
 0xacd   :  { %2579 = vsyncpa [#allocation18], 1 }
 0xace   :  { %2581 = vsyncpa [#allocation18 + $0x1], 1 }
 0xacf   :  { %2582 = vsyncpa [#allocation7], 1 }
 0xad0   :  { %2584 = vsyncpa [#allocation7 + $0x1], 1 }

</bundles_post_ra>
